<compile_context>
chip_gen: v7x
topology: tpu7x:2x2x1
jax: 0.10.0
libtpu: 0.0.40
codegen_flags: <defaults>
</compile_context>

<pallas_src>
import math
from functools import partial

import jax
import jax.numpy as jnp
from jax.experimental import pallas as pl
from jax.experimental.pallas import tpu as pltpu


def _num_tensorcores():
    """Best-effort count of TensorCores sharing one Pallas grid (megacore)."""
    try:
        info = pltpu.get_tpu_info()
        for name in ("num_cores", "num_tensorcores", "tensor_cores_per_chip",
                     "cores_per_chip"):
            v = getattr(info, name, None)
            if isinstance(v, int) and v > 0:
                return v
    except Exception:
        pass
    return 1


def _auto_group_size(n, l, c, num_cores=1):
    """How many (b, t) slabs (G) to process per grid step."""
    # Target ~1-2K token rows per step so per-step pipeline overhead (~0.35us)
    # amortizes; scale down only when C makes the f32 block exceed ~4 MiB.
    target_rows = min(2048, max(256, (4 << 20) // (4 * max(c, 1))))
    g = max(1, min(n, target_rows // max(l, 1)))
    if num_cores > 1 and n >= 2:
        # Multi-TensorCore chip: use a multiple of `num_cores` grid steps so
        # the "parallel" axis splits evenly (no idle core on the last step).
        steps = max(num_cores, pl.cdiv(n, g))
        steps = pl.cdiv(steps, num_cores) * num_cores
        g = max(1, pl.cdiv(n, steps))
    # Blocks smaller than the whole array need sublane-aligned row counts.
    if pl.cdiv(n, g) > 1:
        while g > 1 and (g * l) % 8 != 0:
            g -= 1
        if (g * l) % 8 != 0:
            g = n
    return g


def _cro_attention_kernel(q_ref, kv_ref, wq_ref, bq_ref, wkv_ref, bkv_ref,
                          wm_ref, bm_ref, msq_ref, mbq_ref, mskv_ref, mbkv_ref,
                          o_ref, *, seq_len, num_heads, head_dim):
    GL, C = q_ref.shape                 # GL = G * L token rows
    L = seq_len
    G = GL // L
    H, D = num_heads, head_dim
    eps2 = 1e-24                        # == F.normalize eps=1e-12 on the squared norm

    q_in = q_ref[...].astype(jnp.float32)          # (GL, C), also the residual

    # ---- Projections: wide bf16 MXU matmuls, f32 accumulation ----
    qp = jnp.dot(q_in.astype(jnp.bfloat16), wq_ref[...],
                 preferred_element_type=jnp.float32) + bq_ref[...]        # (GL, C)
    kvp = jnp.dot(kv_ref[...].astype(jnp.bfloat16), wkv_ref[...],
                  preferred_element_type=jnp.float32) + bkv_ref[...]      # (GL, 2C)

    # ---- Per-head L2 normalization via thin head masks ----
    # msq[c, h] = 1 iff channel c belongs to head h, so (x*x) @ msq is each
    # head's sum of squares; rsqrt of that is broadcast back with mbq = msq.T.
    q_ss = jnp.dot(qp * qp, msq_ref[...], preferred_element_type=jnp.float32)      # (GL, H)
    q_inv = jax.lax.rsqrt(jnp.maximum(q_ss, eps2))
    qn = qp * jnp.dot(q_inv, mbq_ref[...], preferred_element_type=jnp.float32)     # (GL, C)

    kv_ss = jnp.dot(kvp * kvp, mskv_ref[...], preferred_element_type=jnp.float32)  # (GL, 2H)
    kv_inv = jax.lax.rsqrt(jnp.maximum(kv_ss, eps2))
    kvn = kvp * jnp.dot(kv_inv, mbkv_ref[...], preferred_element_type=jnp.float32)

    qn3 = qn.reshape(G, L, C)
    kn3 = kvn[:, :C].reshape(G, L, C)
    vn3 = kvn[:, C:].reshape(G, L, C)

    # ---- Attention: all heads fused into one batched einsum pair ----
    # Per-head lane slices stacked once -> (H*G, L, D); no per-head matmul loop.
    qb = jnp.stack([qn3[:, :, h * D:(h + 1) * D] for h in range(H)], 0).reshape(H * G, L, D)
    kb = jnp.stack([kn3[:, :, h * D:(h + 1) * D] for h in range(H)], 0).reshape(H * G, L, D)
    vb = jnp.stack([vn3[:, :, h * D:(h + 1) * D] for h in range(H)], 0).reshape(H * G, L, D)

    scale = 1.0 / math.sqrt(D)
    # q/k are unit vectors per head => |logit| <= 1/sqrt(D): exp cannot
    # overflow and softmax is shift-invariant, so no max-subtraction needed.
    s = jnp.einsum('bqd,bkd->bqk', qb, kb,
                   preferred_element_type=jnp.float32) * scale            # (H*G, L, L)
    p = jnp.exp(s)
    p = p * pl.reciprocal(jnp.sum(p, axis=-1, keepdims=True), approx=True)
    # TODO(synk): drop1 (attention dropout p=0.1) treated as identity (eval mode).
    ob = jnp.einsum('bqk,bkd->bqd', p, vb,
                    preferred_element_type=jnp.float32)                   # (H*G, L, D)

    o4 = ob.reshape(H, G, L, D)
    x = jnp.concatenate([o4[h] for h in range(H)], axis=-1).reshape(GL, C)

    # ---- Single K=C output projection + residual ----
    out = jnp.dot(x.astype(jnp.bfloat16), wm_ref[...],
                  preferred_element_type=jnp.float32) + bm_ref[...]
    # TODO(synk): drop2 (p=0.1) treated as identity (eval mode).
    # TODO(synk): for C < 128, repacking (out + q_in) into a lane-dense
    # (GL//(128//C), 128) slab before storing would remove masked vst's; left
    # out because minor-dim-changing reshapes in Mosaic are version-dependent.
    o_ref[...] = (out + q_in).astype(o_ref.dtype)


def cro_attention(q, kv, params, num_heads, group_size=None):
    B, T, L, C = q.shape
    assert C % num_heads == 0
    H = num_heads
    D = C // H
    N = B * T

    G = group_size if group_size is not None else _auto_group_size(N, L, C, _num_tensorcores())
    n_steps = pl.cdiv(N, G)
    N_pad = n_steps * G
    GL = G * L
    rows = N_pad * L

    qf = q.reshape(N * L, C)
    kvf = kv.reshape(N * L, C)
    if N_pad != N:
        pad_rows = (N_pad - N) * L      # zero-padded slabs are harmless, sliced off below
        qf = jnp.pad(qf, ((0, pad_rows), (0, 0)))
        kvf = jnp.pad(kvf, ((0, pad_rows), (0, 0)))

    # kv stream in bf16 (halves its HBM traffic; MXU consumes bf16 anyway);
    # q stays f32 because it is also the residual. Only when the block keeps
    # the bf16 sublane tiling (16) happy.
    kv_bf16 = (n_steps == 1) or (GL % 16 == 0)
    if kv_bf16:
        kvf = kvf.astype(jnp.bfloat16)

    wq = params['wq'].astype(jnp.bfloat16)
    wkv = params['wkv'].astype(jnp.bfloat16)
    wm = params['wm'].astype(jnp.bfloat16)
    bq, bkv, bm = params['bq'], params['bkv'], params['bm']

    # Thin per-head normalization masks (dedicated q masks -> no in-kernel slicing).
    head_q = jnp.arange(C) // D
    msq = (head_q[:, None] == jnp.arange(H)[None, :]).astype(jnp.float32)        # (C, H)
    mbq = msq.T                                                                  # (H, C)
    head_kv = jnp.arange(2 * C) // D
    mskv = (head_kv[:, None] == jnp.arange(2 * H)[None, :]).astype(jnp.float32)  # (2C, 2H)
    mbkv = mskv.T                                                                # (2H, 2C)

    kernel = partial(_cro_attention_kernel, seq_len=L, num_heads=H, head_dim=D)

    def const_spec(shape):
        # Resident constants: constant index_map, never re-fetched across steps.
        # TODO(synk): pipeline_mode=pl.Buffered(1) would halve their VMEM on v7x.
        return pl.BlockSpec(shape, lambda i: (0,) * len(shape))

    kv_bytes = 2 if kv_bf16 else 4
    weight_bytes = 8 * C * C + 16 * C + 40 * C * H        # bf16 W's + f32 biases/masks
    block_bytes = GL * C * (4 + kv_bytes + 4)             # q, kv, out blocks
    live_bytes = GL * (12 * C + 2 * H * L) * 4            # rough in-kernel temporaries
    vmem_limit = int(min(64 << 20,
                         max(24 << 20, 2 * (block_bytes + weight_bytes) + live_bytes)))

    flops = int(8 * rows * C * C                          # q / kv / out projections
                + 20 * rows * C * H                       # thin norm-mask matmuls
                + 4 * N_pad * H * L * L * D)              # qk^T + att@v
    transcendentals = int(N_pad * H * L * L               # exp
                          + 3 * rows * H                  # rsqrt
                          + N_pad * H * L)                # approx reciprocal
    bytes_accessed = int(rows * C * (4 + kv_bytes + 4) + weight_bytes)

    out = pl.pallas_call(
        kernel,
        out_shape=jax.ShapeDtypeStruct((rows, C), q.dtype),
        grid=(n_steps,),
        in_specs=[
            pl.BlockSpec((GL, C), lambda i: (i, 0)),      # q tokens (f32)
            pl.BlockSpec((GL, C), lambda i: (i, 0)),      # kv tokens (bf16/f32)
            const_spec((C, C)),          # Wq (bf16)
            const_spec((1, C)),          # bq
            const_spec((C, 2 * C)),      # Wkv (bf16)
            const_spec((1, 2 * C)),      # bkv
            const_spec((C, C)),          # Wm (bf16)
            const_spec((1, C)),          # bm
            const_spec((C, H)),          # q sum-of-squares mask
            const_spec((H, C)),          # q broadcast-back mask
            const_spec((2 * C, 2 * H)),  # kv sum-of-squares mask
            const_spec((2 * H, 2 * C)),  # kv broadcast-back mask
        ],
        out_specs=pl.BlockSpec((GL, C), lambda i: (i, 0)),
        compiler_params=pltpu.CompilerParams(
            dimension_semantics=("parallel",),
            vmem_limit_bytes=vmem_limit),
        cost_estimate=pl.CostEstimate(flops=flops,
                                      transcendentals=transcendentals,
                                      bytes_accessed=bytes_accessed),
    )(qf, kvf, wq, bq, wkv, bkv, wm, bm, msq, mbq, mskv, mbkv)

    return out[:N * L].reshape(B, T, L, C)


def cro_attention_ref(q, kv, params, num_heads):
    """Pure-JAX reference mirroring the PyTorch forward exactly (f32)."""
    B, T, L, C = q.shape
    D = C // num_heads
    hp = jax.lax.Precision.HIGHEST

    qp = jnp.einsum('btlc,cd->btld', q, params['wq'], precision=hp) + params['bq'][0]
    kvp = jnp.einsum('btlc,cd->btld', kv, params['wkv'], precision=hp) + params['bkv'][0]

    qh = qp.reshape(B, T, L, num_heads, D).transpose(0, 1, 3, 2, 4)
    k = kvp[..., :C].reshape(B, T, L, num_heads, D).transpose(0, 1, 3, 2, 4)
    v = kvp[..., C:].reshape(B, T, L, num_heads, D).transpose(0, 1, 3, 2, 4)

    def n(x):
        return x / jnp.maximum(jnp.linalg.norm(x, axis=-1, keepdims=True), 1e-12)

    qh, k, v = n(qh), n(k), n(v)
    att = jnp.einsum('bthqd,bthkd->bthqk', qh, k, precision=hp) / math.sqrt(D)
    att = jax.nn.softmax(att, axis=-1)
    x = jnp.einsum('bthqk,bthkd->bthqd', att, v, precision=hp)
    x = x.transpose(0, 1, 3, 2, 4).reshape(B, T, L, C)
    out = jnp.einsum('btlc,cd->btld', x, params['wm'], precision=hp) + params['bm'][0] + q
    return out


if __name__ == "__main__":
    B, T, L, C, H = 2, 2, 8, 32, 8

    key = jax.random.PRNGKey(0)
    ks = jax.random.split(key, 8)
    q = jax.random.normal(ks[0], (B, T, L, C), jnp.float32)
    kv = jax.random.normal(ks[1], (B, T, L, C), jnp.float32)

    s = 0.05
    params = {
        'wq':  s * jax.random.normal(ks[2], (C, C), jnp.float32),
        'bq':  s * jax.random.normal(ks[3], (1, C), jnp.float32),
        'wkv': s * jax.random.normal(ks[4], (C, 2 * C), jnp.float32),
        'bkv': s * jax.random.normal(ks[5], (1, 2 * C), jnp.float32),
        'wm':  s * jax.random.normal(ks[6], (C, C), jnp.float32),
        'bm':  s * jax.random.normal(ks[7], (1, C), jnp.float32),
    }

    out = cro_attention(q, kv, params, num_heads=H)
    out = jax.block_until_ready(out)

    ref = jax.block_until_ready(cro_attention_ref(q, kv, params, num_heads=H))
    assert out.shape == (B, T, L, C)
    max_err = float(jnp.max(jnp.abs(out - ref)))
    assert max_err < 1e-2, f"mismatch vs reference: max abs err {max_err}"

    print("KERNEL_OK")
</pallas_src>

<mosaic_0001>
module attributes {stable_mosaic.version = 11 : i64} {
  func.func @_cro_attention_kernel(%arg0: i32, %arg1: memref<32x32xf32, #tpu.memory_space<vmem>>, %arg2: memref<32x32xbf16, #tpu.memory_space<vmem>>, %arg3: memref<32x32xbf16, #tpu.memory_space<vmem>>, %arg4: memref<1x32xf32, #tpu.memory_space<vmem>>, %arg5: memref<32x64xbf16, #tpu.memory_space<vmem>>, %arg6: memref<1x64xf32, #tpu.memory_space<vmem>>, %arg7: memref<32x32xbf16, #tpu.memory_space<vmem>>, %arg8: memref<1x32xf32, #tpu.memory_space<vmem>>, %arg9: memref<32x8xf32, #tpu.memory_space<vmem>>, %arg10: memref<8x32xf32, #tpu.memory_space<vmem>>, %arg11: memref<64x16xf32, #tpu.memory_space<vmem>>, %arg12: memref<16x64xf32, #tpu.memory_space<vmem>>, %arg13: memref<32x32xf32, #tpu.memory_space<vmem>>) attributes {dimension_semantics = [#tpu.dimension_semantics<parallel>], iteration_bounds = array<i64: 1>, scalar_prefetch = 0 : i64, scratch_operands = 0 : i64, tpu.core_type = #tpu.core_type<tc>, window_params = [{transform_indices = @transform_0, window_bounds = array<i64: 32, 32>}, {transform_indices = @transform_1, window_bounds = array<i64: 32, 32>}, {pipeline_mode = #tpu.pipeline_mode<synchronous>, transform_indices = @transform_2, window_bounds = array<i64: 32, 32>}, {pipeline_mode = #tpu.pipeline_mode<synchronous>, transform_indices = @transform_3, window_bounds = array<i64: 1, 32>}, {pipeline_mode = #tpu.pipeline_mode<synchronous>, transform_indices = @transform_4, window_bounds = array<i64: 32, 64>}, {pipeline_mode = #tpu.pipeline_mode<synchronous>, transform_indices = @transform_5, window_bounds = array<i64: 1, 64>}, {pipeline_mode = #tpu.pipeline_mode<synchronous>, transform_indices = @transform_6, window_bounds = array<i64: 32, 32>}, {pipeline_mode = #tpu.pipeline_mode<synchronous>, transform_indices = @transform_7, window_bounds = array<i64: 1, 32>}, {pipeline_mode = #tpu.pipeline_mode<synchronous>, transform_indices = @transform_8, window_bounds = array<i64: 32, 8>}, {pipeline_mode = #tpu.pipeline_mode<synchronous>, transform_indices = @transform_9, window_bounds = array<i64: 8, 32>}, {pipeline_mode = #tpu.pipeline_mode<synchronous>, transform_indices = @transform_10, window_bounds = array<i64: 64, 16>}, {pipeline_mode = #tpu.pipeline_mode<synchronous>, transform_indices = @transform_11, window_bounds = array<i64: 16, 64>}, {transform_indices = @transform_12, window_bounds = array<i64: 32, 32>}]} {
    %c0 = arith.constant 0 : index
    %c0_0 = arith.constant 0 : index
    %0 = vector.load %arg1[%c0, %c0_0] : memref<32x32xf32, #tpu.memory_space<vmem>>, vector<32x32xf32>
    %1 = arith.truncf %0 : vector<32x32xf32> to vector<32x32xbf16>
    %c0_1 = arith.constant 0 : index
    %c0_2 = arith.constant 0 : index
    %2 = vector.load %arg3[%c0_1, %c0_2] : memref<32x32xbf16, #tpu.memory_space<vmem>>, vector<32x32xbf16>
    %cst = arith.constant dense<0.000000e+00> : vector<32x32xf32>
    %3 = tpu.matmul %1, %2, %cst {dimension_numbers = #tpu.dot_dimension_numbers<[1], [0], [0], [1], [0, 0, 1, 1], [], []>} : vector<32x32xbf16>, vector<32x32xbf16>, vector<32x32xf32> -> vector<32x32xf32>
    %c0_3 = arith.constant 0 : index
    %c0_4 = arith.constant 0 : index
    %4 = vector.load %arg4[%c0_3, %c0_4] : memref<1x32xf32, #tpu.memory_space<vmem>>, vector<1x32xf32>
    %5 = vector.broadcast %4 : vector<1x32xf32> to vector<32x32xf32>
    %6 = arith.addf %3, %5 : vector<32x32xf32>
    %c0_5 = arith.constant 0 : index
    %c0_6 = arith.constant 0 : index
    %7 = vector.load %arg2[%c0_5, %c0_6] : memref<32x32xbf16, #tpu.memory_space<vmem>>, vector<32x32xbf16>
    %c0_7 = arith.constant 0 : index
    %c0_8 = arith.constant 0 : index
    %8 = vector.load %arg5[%c0_7, %c0_8] : memref<32x64xbf16, #tpu.memory_space<vmem>>, vector<32x64xbf16>
    %cst_9 = arith.constant dense<0.000000e+00> : vector<32x64xf32>
    %9 = tpu.matmul %7, %8, %cst_9 {dimension_numbers = #tpu.dot_dimension_numbers<[1], [0], [0], [1], [0, 0, 1, 1], [], []>} : vector<32x32xbf16>, vector<32x64xbf16>, vector<32x64xf32> -> vector<32x64xf32>
    %c0_10 = arith.constant 0 : index
    %c0_11 = arith.constant 0 : index
    %10 = vector.load %arg6[%c0_10, %c0_11] : memref<1x64xf32, #tpu.memory_space<vmem>>, vector<1x64xf32>
    %11 = vector.broadcast %10 : vector<1x64xf32> to vector<32x64xf32>
    %12 = arith.addf %9, %11 : vector<32x64xf32>
    %13 = arith.mulf %6, %6 : vector<32x32xf32>
    %c0_12 = arith.constant 0 : index
    %c0_13 = arith.constant 0 : index
    %14 = vector.load %arg9[%c0_12, %c0_13] : memref<32x8xf32, #tpu.memory_space<vmem>>, vector<32x8xf32>
    %cst_14 = arith.constant dense<0.000000e+00> : vector<32x8xf32>
    %15 = tpu.matmul %13, %14, %cst_14 {dimension_numbers = #tpu.dot_dimension_numbers<[1], [0], [0], [1], [0, 0, 1, 1], [], []>} : vector<32x32xf32>, vector<32x8xf32>, vector<32x8xf32> -> vector<32x8xf32>
    %cst_15 = arith.constant 1.000000e-24 : f32
    %16 = vector.broadcast %cst_15 : f32 to vector<32x8xf32>
    %17 = arith.maximumf %15, %16 : vector<32x8xf32>
    %18 = math.rsqrt %17 : vector<32x8xf32>
    %c0_16 = arith.constant 0 : index
    %c0_17 = arith.constant 0 : index
    %19 = vector.load %arg10[%c0_16, %c0_17] : memref<8x32xf32, #tpu.memory_space<vmem>>, vector<8x32xf32>
    %cst_18 = arith.constant dense<0.000000e+00> : vector<32x32xf32>
    %20 = tpu.matmul %18, %19, %cst_18 {dimension_numbers = #tpu.dot_dimension_numbers<[1], [0], [0], [1], [0, 0, 1, 1], [], []>} : vector<32x8xf32>, vector<8x32xf32>, vector<32x32xf32> -> vector<32x32xf32>
    %21 = arith.mulf %6, %20 : vector<32x32xf32>
    %22 = arith.mulf %12, %12 : vector<32x64xf32>
    %c0_19 = arith.constant 0 : index
    %c0_20 = arith.constant 0 : index
    %23 = vector.load %arg11[%c0_19, %c0_20] : memref<64x16xf32, #tpu.memory_space<vmem>>, vector<64x16xf32>
    %cst_21 = arith.constant dense<0.000000e+00> : vector<32x16xf32>
    %24 = tpu.matmul %22, %23, %cst_21 {dimension_numbers = #tpu.dot_dimension_numbers<[1], [0], [0], [1], [0, 0, 1, 1], [], []>} : vector<32x64xf32>, vector<64x16xf32>, vector<32x16xf32> -> vector<32x16xf32>
    %cst_22 = arith.constant 1.000000e-24 : f32
    %25 = vector.broadcast %cst_22 : f32 to vector<32x16xf32>
    %26 = arith.maximumf %24, %25 : vector<32x16xf32>
    %27 = math.rsqrt %26 : vector<32x16xf32>
    %c0_23 = arith.constant 0 : index
    %c0_24 = arith.constant 0 : index
    %28 = vector.load %arg12[%c0_23, %c0_24] : memref<16x64xf32, #tpu.memory_space<vmem>>, vector<16x64xf32>
    %cst_25 = arith.constant dense<0.000000e+00> : vector<32x64xf32>
    %29 = tpu.matmul %27, %28, %cst_25 {dimension_numbers = #tpu.dot_dimension_numbers<[1], [0], [0], [1], [0, 0, 1, 1], [], []>} : vector<32x16xf32>, vector<16x64xf32>, vector<32x64xf32> -> vector<32x64xf32>
    %30 = arith.mulf %12, %29 : vector<32x64xf32>
    %31 = vector.shape_cast %21 : vector<32x32xf32> to vector<4x8x32xf32>
    %32 = vector.extract_strided_slice %30 {offsets = [0, 0], sizes = [32, 32], strides = [1, 1]} : vector<32x64xf32> to vector<32x32xf32>
    %33 = vector.shape_cast %32 : vector<32x32xf32> to vector<4x8x32xf32>
    %34 = vector.extract_strided_slice %30 {offsets = [0, 32], sizes = [32, 32], strides = [1, 1]} : vector<32x64xf32> to vector<32x32xf32>
    %35 = vector.shape_cast %34 : vector<32x32xf32> to vector<4x8x32xf32>
    %36 = vector.extract_strided_slice %31 {offsets = [0, 0, 0], sizes = [4, 8, 4], strides = [1, 1, 1]} : vector<4x8x32xf32> to vector<4x8x4xf32>
    %37 = vector.extract_strided_slice %31 {offsets = [0, 0, 4], sizes = [4, 8, 4], strides = [1, 1, 1]} : vector<4x8x32xf32> to vector<4x8x4xf32>
    %38 = vector.extract_strided_slice %31 {offsets = [0, 0, 8], sizes = [4, 8, 4], strides = [1, 1, 1]} : vector<4x8x32xf32> to vector<4x8x4xf32>
    %39 = vector.extract_strided_slice %31 {offsets = [0, 0, 12], sizes = [4, 8, 4], strides = [1, 1, 1]} : vector<4x8x32xf32> to vector<4x8x4xf32>
    %40 = vector.extract_strided_slice %31 {offsets = [0, 0, 16], sizes = [4, 8, 4], strides = [1, 1, 1]} : vector<4x8x32xf32> to vector<4x8x4xf32>
    %41 = vector.extract_strided_slice %31 {offsets = [0, 0, 20], sizes = [4, 8, 4], strides = [1, 1, 1]} : vector<4x8x32xf32> to vector<4x8x4xf32>
    %42 = vector.extract_strided_slice %31 {offsets = [0, 0, 24], sizes = [4, 8, 4], strides = [1, 1, 1]} : vector<4x8x32xf32> to vector<4x8x4xf32>
    %43 = vector.extract_strided_slice %31 {offsets = [0, 0, 28], sizes = [4, 8, 4], strides = [1, 1, 1]} : vector<4x8x32xf32> to vector<4x8x4xf32>
    %44 = vector.shape_cast %36 : vector<4x8x4xf32> to vector<1x4x8x4xf32>
    %45 = vector.shape_cast %37 : vector<4x8x4xf32> to vector<1x4x8x4xf32>
    %46 = vector.shape_cast %38 : vector<4x8x4xf32> to vector<1x4x8x4xf32>
    %47 = vector.shape_cast %39 : vector<4x8x4xf32> to vector<1x4x8x4xf32>
    %48 = vector.shape_cast %40 : vector<4x8x4xf32> to vector<1x4x8x4xf32>
    %49 = vector.shape_cast %41 : vector<4x8x4xf32> to vector<1x4x8x4xf32>
    %50 = vector.shape_cast %42 : vector<4x8x4xf32> to vector<1x4x8x4xf32>
    %51 = vector.shape_cast %43 : vector<4x8x4xf32> to vector<1x4x8x4xf32>
    %52 = tpu.concatenate %44, %45, %46, %47, %48, %49, %50, %51 in 0 : vector<1x4x8x4xf32>, vector<1x4x8x4xf32>, vector<1x4x8x4xf32>, vector<1x4x8x4xf32>, vector<1x4x8x4xf32>, vector<1x4x8x4xf32>, vector<1x4x8x4xf32>, vector<1x4x8x4xf32> -> vector<8x4x8x4xf32>
    %53 = vector.shape_cast %52 : vector<8x4x8x4xf32> to vector<32x8x4xf32>
    %54 = vector.extract_strided_slice %33 {offsets = [0, 0, 0], sizes = [4, 8, 4], strides = [1, 1, 1]} : vector<4x8x32xf32> to vector<4x8x4xf32>
    %55 = vector.extract_strided_slice %33 {offsets = [0, 0, 4], sizes = [4, 8, 4], strides = [1, 1, 1]} : vector<4x8x32xf32> to vector<4x8x4xf32>
    %56 = vector.extract_strided_slice %33 {offsets = [0, 0, 8], sizes = [4, 8, 4], strides = [1, 1, 1]} : vector<4x8x32xf32> to vector<4x8x4xf32>
    %57 = vector.extract_strided_slice %33 {offsets = [0, 0, 12], sizes = [4, 8, 4], strides = [1, 1, 1]} : vector<4x8x32xf32> to vector<4x8x4xf32>
    %58 = vector.extract_strided_slice %33 {offsets = [0, 0, 16], sizes = [4, 8, 4], strides = [1, 1, 1]} : vector<4x8x32xf32> to vector<4x8x4xf32>
    %59 = vector.extract_strided_slice %33 {offsets = [0, 0, 20], sizes = [4, 8, 4], strides = [1, 1, 1]} : vector<4x8x32xf32> to vector<4x8x4xf32>
    %60 = vector.extract_strided_slice %33 {offsets = [0, 0, 24], sizes = [4, 8, 4], strides = [1, 1, 1]} : vector<4x8x32xf32> to vector<4x8x4xf32>
    %61 = vector.extract_strided_slice %33 {offsets = [0, 0, 28], sizes = [4, 8, 4], strides = [1, 1, 1]} : vector<4x8x32xf32> to vector<4x8x4xf32>
    %62 = vector.shape_cast %54 : vector<4x8x4xf32> to vector<1x4x8x4xf32>
    %63 = vector.shape_cast %55 : vector<4x8x4xf32> to vector<1x4x8x4xf32>
    %64 = vector.shape_cast %56 : vector<4x8x4xf32> to vector<1x4x8x4xf32>
    %65 = vector.shape_cast %57 : vector<4x8x4xf32> to vector<1x4x8x4xf32>
    %66 = vector.shape_cast %58 : vector<4x8x4xf32> to vector<1x4x8x4xf32>
    %67 = vector.shape_cast %59 : vector<4x8x4xf32> to vector<1x4x8x4xf32>
    %68 = vector.shape_cast %60 : vector<4x8x4xf32> to vector<1x4x8x4xf32>
    %69 = vector.shape_cast %61 : vector<4x8x4xf32> to vector<1x4x8x4xf32>
    %70 = tpu.concatenate %62, %63, %64, %65, %66, %67, %68, %69 in 0 : vector<1x4x8x4xf32>, vector<1x4x8x4xf32>, vector<1x4x8x4xf32>, vector<1x4x8x4xf32>, vector<1x4x8x4xf32>, vector<1x4x8x4xf32>, vector<1x4x8x4xf32>, vector<1x4x8x4xf32> -> vector<8x4x8x4xf32>
    %71 = vector.shape_cast %70 : vector<8x4x8x4xf32> to vector<32x8x4xf32>
    %72 = vector.extract_strided_slice %35 {offsets = [0, 0, 0], sizes = [4, 8, 4], strides = [1, 1, 1]} : vector<4x8x32xf32> to vector<4x8x4xf32>
    %73 = vector.extract_strided_slice %35 {offsets = [0, 0, 4], sizes = [4, 8, 4], strides = [1, 1, 1]} : vector<4x8x32xf32> to vector<4x8x4xf32>
    %74 = vector.extract_strided_slice %35 {offsets = [0, 0, 8], sizes = [4, 8, 4], strides = [1, 1, 1]} : vector<4x8x32xf32> to vector<4x8x4xf32>
    %75 = vector.extract_strided_slice %35 {offsets = [0, 0, 12], sizes = [4, 8, 4], strides = [1, 1, 1]} : vector<4x8x32xf32> to vector<4x8x4xf32>
    %76 = vector.extract_strided_slice %35 {offsets = [0, 0, 16], sizes = [4, 8, 4], strides = [1, 1, 1]} : vector<4x8x32xf32> to vector<4x8x4xf32>
    %77 = vector.extract_strided_slice %35 {offsets = [0, 0, 20], sizes = [4, 8, 4], strides = [1, 1, 1]} : vector<4x8x32xf32> to vector<4x8x4xf32>
    %78 = vector.extract_strided_slice %35 {offsets = [0, 0, 24], sizes = [4, 8, 4], strides = [1, 1, 1]} : vector<4x8x32xf32> to vector<4x8x4xf32>
    %79 = vector.extract_strided_slice %35 {offsets = [0, 0, 28], sizes = [4, 8, 4], strides = [1, 1, 1]} : vector<4x8x32xf32> to vector<4x8x4xf32>
    %80 = vector.shape_cast %72 : vector<4x8x4xf32> to vector<1x4x8x4xf32>
    %81 = vector.shape_cast %73 : vector<4x8x4xf32> to vector<1x4x8x4xf32>
    %82 = vector.shape_cast %74 : vector<4x8x4xf32> to vector<1x4x8x4xf32>
    %83 = vector.shape_cast %75 : vector<4x8x4xf32> to vector<1x4x8x4xf32>
    %84 = vector.shape_cast %76 : vector<4x8x4xf32> to vector<1x4x8x4xf32>
    %85 = vector.shape_cast %77 : vector<4x8x4xf32> to vector<1x4x8x4xf32>
    %86 = vector.shape_cast %78 : vector<4x8x4xf32> to vector<1x4x8x4xf32>
    %87 = vector.shape_cast %79 : vector<4x8x4xf32> to vector<1x4x8x4xf32>
    %88 = tpu.concatenate %80, %81, %82, %83, %84, %85, %86, %87 in 0 : vector<1x4x8x4xf32>, vector<1x4x8x4xf32>, vector<1x4x8x4xf32>, vector<1x4x8x4xf32>, vector<1x4x8x4xf32>, vector<1x4x8x4xf32>, vector<1x4x8x4xf32>, vector<1x4x8x4xf32> -> vector<8x4x8x4xf32>
    %89 = vector.shape_cast %88 : vector<8x4x8x4xf32> to vector<32x8x4xf32>
    "tpu.trace_start"() <{level = 10 : i32, message = "bqd,bkd->bqk"}> : () -> ()
    %cst_26 = arith.constant dense<0.000000e+00> : vector<32x8x8xf32>
    %90 = tpu.matmul %53, %71, %cst_26 {dimension_numbers = #tpu.dot_dimension_numbers<[2], [2], [1], [1], [0, 0, 0, 1, 1, 1], [0], [0]>} : vector<32x8x4xf32>, vector<32x8x4xf32>, vector<32x8x8xf32> -> vector<32x8x8xf32>
    "tpu.trace_stop"() : () -> ()
    %cst_27 = arith.constant 5.000000e-01 : f32
    %91 = vector.broadcast %cst_27 : f32 to vector<32x8x8xf32>
    %92 = arith.mulf %90, %91 : vector<32x8x8xf32>
    %93 = math.exp %92 : vector<32x8x8xf32>
    %cst_28 = arith.constant dense<0.000000e+00> : vector<32x8xf32>
    %94 = vector.multi_reduction <add>, %93, %cst_28 [2] : vector<32x8x8xf32> to vector<32x8xf32>
    %95 = vector.shape_cast %94 : vector<32x8xf32> to vector<32x8x1xf32>
    %96 = tpu.reciprocal %95 {approx = true} : vector<32x8x1xf32> -> vector<32x8x1xf32>
    %97 = vector.broadcast %96 : vector<32x8x1xf32> to vector<32x8x8xf32>
    %98 = arith.mulf %93, %97 : vector<32x8x8xf32>
    "tpu.trace_start"() <{level = 10 : i32, message = "bqk,bkd->bqd"}> : () -> ()
    %cst_29 = arith.constant dense<0.000000e+00> : vector<32x8x4xf32>
    %99 = tpu.matmul %98, %89, %cst_29 {dimension_numbers = #tpu.dot_dimension_numbers<[2], [1], [1], [2], [0, 0, 0, 1, 1, 2], [0], [0]>} : vector<32x8x8xf32>, vector<32x8x4xf32>, vector<32x8x4xf32> -> vector<32x8x4xf32>
    "tpu.trace_stop"() : () -> ()
    %100 = vector.shape_cast %99 : vector<32x8x4xf32> to vector<8x4x8x4xf32>
    %101 = vector.extract_strided_slice %100 {offsets = [0, 0, 0, 0], sizes = [1, 4, 8, 4], strides = [1, 1, 1, 1]} : vector<8x4x8x4xf32> to vector<1x4x8x4xf32>
    %102 = vector.shape_cast %101 : vector<1x4x8x4xf32> to vector<4x8x4xf32>
    %103 = vector.extract_strided_slice %100 {offsets = [1, 0, 0, 0], sizes = [1, 4, 8, 4], strides = [1, 1, 1, 1]} : vector<8x4x8x4xf32> to vector<1x4x8x4xf32>
    %104 = vector.shape_cast %103 : vector<1x4x8x4xf32> to vector<4x8x4xf32>
    %105 = vector.extract_strided_slice %100 {offsets = [2, 0, 0, 0], sizes = [1, 4, 8, 4], strides = [1, 1, 1, 1]} : vector<8x4x8x4xf32> to vector<1x4x8x4xf32>
    %106 = vector.shape_cast %105 : vector<1x4x8x4xf32> to vector<4x8x4xf32>
    %107 = vector.extract_strided_slice %100 {offsets = [3, 0, 0, 0], sizes = [1, 4, 8, 4], strides = [1, 1, 1, 1]} : vector<8x4x8x4xf32> to vector<1x4x8x4xf32>
    %108 = vector.shape_cast %107 : vector<1x4x8x4xf32> to vector<4x8x4xf32>
    %109 = vector.extract_strided_slice %100 {offsets = [4, 0, 0, 0], sizes = [1, 4, 8, 4], strides = [1, 1, 1, 1]} : vector<8x4x8x4xf32> to vector<1x4x8x4xf32>
    %110 = vector.shape_cast %109 : vector<1x4x8x4xf32> to vector<4x8x4xf32>
    %111 = vector.extract_strided_slice %100 {offsets = [5, 0, 0, 0], sizes = [1, 4, 8, 4], strides = [1, 1, 1, 1]} : vector<8x4x8x4xf32> to vector<1x4x8x4xf32>
    %112 = vector.shape_cast %111 : vector<1x4x8x4xf32> to vector<4x8x4xf32>
    %113 = vector.extract_strided_slice %100 {offsets = [6, 0, 0, 0], sizes = [1, 4, 8, 4], strides = [1, 1, 1, 1]} : vector<8x4x8x4xf32> to vector<1x4x8x4xf32>
    %114 = vector.shape_cast %113 : vector<1x4x8x4xf32> to vector<4x8x4xf32>
    %115 = vector.extract_strided_slice %100 {offsets = [7, 0, 0, 0], sizes = [1, 4, 8, 4], strides = [1, 1, 1, 1]} : vector<8x4x8x4xf32> to vector<1x4x8x4xf32>
    %116 = vector.shape_cast %115 : vector<1x4x8x4xf32> to vector<4x8x4xf32>
    %117 = tpu.concatenate %102, %104, %106, %108, %110, %112, %114, %116 in 2 : vector<4x8x4xf32>, vector<4x8x4xf32>, vector<4x8x4xf32>, vector<4x8x4xf32>, vector<4x8x4xf32>, vector<4x8x4xf32>, vector<4x8x4xf32>, vector<4x8x4xf32> -> vector<4x8x32xf32>
    %118 = vector.shape_cast %117 : vector<4x8x32xf32> to vector<32x32xf32>
    %119 = arith.truncf %118 : vector<32x32xf32> to vector<32x32xbf16>
    %c0_30 = arith.constant 0 : index
    %c0_31 = arith.constant 0 : index
    %120 = vector.load %arg7[%c0_30, %c0_31] : memref<32x32xbf16, #tpu.memory_space<vmem>>, vector<32x32xbf16>
    %cst_32 = arith.constant dense<0.000000e+00> : vector<32x32xf32>
    %121 = tpu.matmul %119, %120, %cst_32 {dimension_numbers = #tpu.dot_dimension_numbers<[1], [0], [0], [1], [0, 0, 1, 1], [], []>} : vector<32x32xbf16>, vector<32x32xbf16>, vector<32x32xf32> -> vector<32x32xf32>
    %c0_33 = arith.constant 0 : index
    %c0_34 = arith.constant 0 : index
    %122 = vector.load %arg8[%c0_33, %c0_34] : memref<1x32xf32, #tpu.memory_space<vmem>>, vector<1x32xf32>
    %123 = vector.broadcast %122 : vector<1x32xf32> to vector<32x32xf32>
    %124 = arith.addf %121, %123 : vector<32x32xf32>
    %125 = arith.addf %124, %0 : vector<32x32xf32>
    %c0_35 = arith.constant 0 : index
    %c0_36 = arith.constant 0 : index
    %126 = vector.load %arg13[%c0_35, %c0_36] : memref<32x32xf32, #tpu.memory_space<vmem>>, vector<32x32xf32>
    tpu.vector_store %arg13[%c0_35, %c0_36], %125 {strides = array<i32>} : memref<32x32xf32, #tpu.memory_space<vmem>>, vector<32x32xf32>,
    return
  }
  func.func @transform_0(%arg0: i32) -> (i32, i32) {
    %c0_i32 = arith.constant 0 : i32
    %c0_i32_0 = arith.constant 0 : i32
    return %arg0, %c0_i32 : i32, i32
  }
  func.func @transform_1(%arg0: i32) -> (i32, i32) {
    %c0_i32 = arith.constant 0 : i32
    %c0_i32_0 = arith.constant 0 : i32
    return %arg0, %c0_i32 : i32, i32
  }
  func.func @transform_2(%arg0: i32) -> (i32, i32) {
    %c0_i32 = arith.constant 0 : i32
    %c0_i32_0 = arith.constant 0 : i32
    %c0_i32_1 = arith.constant 0 : i32
    return %c0_i32, %c0_i32_0 : i32, i32
  }
  func.func @transform_3(%arg0: i32) -> (i32, i32) {
    %c0_i32 = arith.constant 0 : i32
    %c0_i32_0 = arith.constant 0 : i32
    %c0_i32_1 = arith.constant 0 : i32
    return %c0_i32, %c0_i32_0 : i32, i32
  }
  func.func @transform_4(%arg0: i32) -> (i32, i32) {
    %c0_i32 = arith.constant 0 : i32
    %c0_i32_0 = arith.constant 0 : i32
    %c0_i32_1 = arith.constant 0 : i32
    return %c0_i32, %c0_i32_0 : i32, i32
  }
  func.func @transform_5(%arg0: i32) -> (i32, i32) {
    %c0_i32 = arith.constant 0 : i32
    %c0_i32_0 = arith.constant 0 : i32
    %c0_i32_1 = arith.constant 0 : i32
    return %c0_i32, %c0_i32_0 : i32, i32
  }
  func.func @transform_6(%arg0: i32) -> (i32, i32) {
    %c0_i32 = arith.constant 0 : i32
    %c0_i32_0 = arith.constant 0 : i32
    %c0_i32_1 = arith.constant 0 : i32
    return %c0_i32, %c0_i32_0 : i32, i32
  }
  func.func @transform_7(%arg0: i32) -> (i32, i32) {
    %c0_i32 = arith.constant 0 : i32
    %c0_i32_0 = arith.constant 0 : i32
    %c0_i32_1 = arith.constant 0 : i32
    return %c0_i32, %c0_i32_0 : i32, i32
  }
  func.func @transform_8(%arg0: i32) -> (i32, i32) {
    %c0_i32 = arith.constant 0 : i32
    %c0_i32_0 = arith.constant 0 : i32
    %c0_i32_1 = arith.constant 0 : i32
    return %c0_i32, %c0_i32_0 : i32, i32
  }
  func.func @transform_9(%arg0: i32) -> (i32, i32) {
    %c0_i32 = arith.constant 0 : i32
    %c0_i32_0 = arith.constant 0 : i32
    %c0_i32_1 = arith.constant 0 : i32
    return %c0_i32, %c0_i32_0 : i32, i32
  }
  func.func @transform_10(%arg0: i32) -> (i32, i32) {
    %c0_i32 = arith.constant 0 : i32
    %c0_i32_0 = arith.constant 0 : i32
    %c0_i32_1 = arith.constant 0 : i32
    return %c0_i32, %c0_i32_0 : i32, i32
  }
  func.func @transform_11(%arg0: i32) -> (i32, i32) {
    %c0_i32 = arith.constant 0 : i32
    %c0_i32_0 = arith.constant 0 : i32
    %c0_i32_1 = arith.constant 0 : i32
    return %c0_i32, %c0_i32_0 : i32, i32
  }
  func.func @transform_12(%arg0: i32) -> (i32, i32) {
    %c0_i32 = arith.constant 0 : i32
    %c0_i32_0 = arith.constant 0 : i32
    return %arg0, %c0_i32 : i32, i32
  }
}

</mosaic_0001>

<bundles_post_ra>
// kernel: tpu_custom_call.1
= control target key start
LH: loop header
LB: loop body
LE: loop exit
PB: predicated region body
PF: predicated region fallthrough
CT: control target
= control target key end

     0   :  { %17 = vsyncpa [#allocation3], 0  ;;  %s8213_s0 = inlined_call_operand.vmem [shape: f32[32,32], index: 0, kind: input, shape index: {}]   ;;  %s8214_s1 = inlined_call_operand.vmem [shape: bf16[32,32], index: 1, kind: input, shape index: {}]   ;;  %s8215_s2 = inlined_call_operand.vmem [shape: bf16[32,32], index: 2, kind: input, shape index: {}]   ;;  %s8216_s3 = inlined_call_operand.vmem [shape: f32[1,32], index: 3, kind: input, shape index: {}]   ;;  %s8217_s4 = inlined_call_operand.vmem [shape: bf16[32,64], index: 4, kind: input, shape index: {}]   ;;  %s8218_s5 = inlined_call_operand.vmem [shape: f32[1,64], index: 5, kind: input, shape index: {}]   ;;  %s8219_s6 = inlined_call_operand.vmem [shape: bf16[32,32], index: 6, kind: input, shape index: {}]   ;;  %s8220_s7 = inlined_call_operand.hbm [shape: f32[1,32], index: 7, kind: input, shape index: {}]   ;;  %s8221_s8 = inlined_call_operand.vmem [shape: f32[32,8], index: 8, kind: input, shape index: {}]   ;;  %s8222_s9 = inlined_call_operand.vmem [shape: f32[8,32], index: 9, kind: input, shape index: {}]   ;;  %s8223_s10 = inlined_call_operand.vmem [shape: f32[64,16], index: 10, kind: input, shape index: {}]   ;;  %s8224_s11 = inlined_call_operand.vmem [shape: f32[16,64], index: 11, kind: input, shape index: {}]   ;;  %s8225_s12 = inlined_call_operand.hbm [shape: f32[32,32], index: 12, kind: output, shape index: {}]  }
   0x1   :  { %18 = vsyncpa [#allocation4], 0  ;;  %s7116_s21 = smov [#allocation2]   ;;  %s7068_s25 = scalar_lea.hbm %s8220_s7, 16 }
   0x2   :  { %s39_s22 = sshll.u32 %s7116_s21, 4  ;;  %p7069_p0 = scmp.ne.s32.totalorder %s8220_s7, %s7068_s25  ;;  %s40_s22 = int_to_ptr.vmem [resolvable:$true] %s39_s22 }
   0x3   :  { %p7072_p1 = scmp.lt.u32.totalorder %s7068_s25, %s8220_s7 }
   0x5   :  { %p7074_p2 = pnand %p7072_p1, %p7069_p0 }
   0x7   :  { %7077 = shalt.err (!%p7074_p2)
}
   0x8   :  { %s7078_s30 = scalar_lea.vmem %s40_s22, 16  ;;  %s7082_s13 = scalar_lea.vmem %s40_s22, 32 }
   0x9   :  { %p7079_p3 = scmp.ne.s32.totalorder %s40_s22, %s7078_s30  ;;  %p7083_p4 = scmp.lt.s32.totalorder %s40_s22, %s40_s22 }
   0xa   :  { %p7084_p5 = scmp.lt.s32.totalorder %s7082_s13, %s7078_s30 }
   0xc   :  { %p7085_p6 = por %p7084_p5, %p7083_p4 }
   0xe   :  { %p7086_p7 = pnand %p7085_p6, %p7079_p3 }
  0x10   :  { %7089 = shalt.err (!%p7086_p7)
}
  0x11   :  { %42 = dma.hbm_to_vmem [thread:$0]  %s8220_s7, 16, %s40_s22, [#allocation3]  }
  0x12   :  { %7112 = dma.done.wait [#allocation3], 16  }
  0x13   :  { %7113 = vsyncadd [#allocation3], 4294967280  ;;  %v6912_v0 = vld [vmem:[%s8215_s2] sm:$0xff]   ;;  %v6913_v1 = vld [vmem:[%s8215_s2 + $0x8] sm:$0xff]   ;;  %vm84_vm0 = vcmask 261120   ;;  %vm460_vm1 = vcmask 523264  }
  0x14   :  { %6396 = vmatprep.subr.bf16.mxu1 %v6912_v0  ;;  %v55_v2 = vld [vmem:[%s8213_s0] sm:$0xff]  ;;  %v56_v3 = vld [vmem:[%s8213_s0 + $0x8] sm:$0xff]  ;;  %v57_v4 = vld [vmem:[%s8213_s0 + $0x10] sm:$0xff]  ;;  %vm346_vm2 = vcmask 64512   ;;  %vm568_vm3 = vcmask 130048   ;;  %vm7118_vm4 = vmmov 0  }
  0x15   :  { %6397 = vmatpush3.bf16.msra.mxu1 %v6912_v0  ;;  %v59_v5 = vpack.c.bf16 %v56_v3, %v55_v2  ;;  %v58_v6 = vld [vmem:[%s8213_s0 + $0x18] sm:$0xff]  ;;  %v6914_v7 = vld [vmem:[%s8217_s4] sm:$0xff]   ;;  %v6915_v9 = vld [vmem:[%s8217_s4 + $0x8] sm:$0xff]   ;;  %s7121_s24 = smov 116   ;;  %s7122_s7 = smov 112   ;;  %vm790_vm5 = vcmask 31744  }
  0x16   :  { %6398 = vmatprep.subr.bf16.mxu1 %v6913_v1  ;;  %v60_v8 = vpack.c.bf16 %v58_v6, %v57_v4  ;;  %v6916_v10 = vld [vmem:[%s8214_s1] sm:$0xff]   ;;  %v237_v12 = vld [vmem:[%s8221_s8 + $0x8] sm:$0xff]  ;;  %v238_v15 = vld [vmem:[%s8221_s8 + $0x10] sm:$0xff]  ;;  %s7123_s22 = smov 108   ;;  %s7125_s25 = smov 100   ;;  %vm5967_vm6 = vcmask 97280  }
  0x17   :  { %6400 = vmatprep.mubr.msk.bf16.mxu1 %vm84_vm0, %v59_v5  ;;  %v236_v11 = vld [vmem:[%s8221_s8] sm:$0xff]  ;;  %v6917_v14 = vld [vmem:[%s8214_s1 + $0x8] sm:$0xff]   ;;  %v239_v16 = vld [vmem:[%s8221_s8 + $0x18] sm:$0xff]  ;;  %s7124_s1 = smov 104   ;;  %s7126_s26 = smov 96   ;;  %vm5976_vm7 = vcmask 162816  }
  0x18   :  { %v6794_v13 = vpack.c.bf16 %v237_v12, %v236_v11  ;;  %v6798_v17 = vpack.c.bf16 %v239_v16, %v238_v15  ;;  %v452_v18 = vld [vmem:[%s8223_s10] sm:$0xff]  ;;  %v453_v19 = vld [vmem:[%s8223_s10 + $0x8] sm:$0xff]  ;;  %v454_v28 = vld [vmem:[%s8223_s10 + $0x10] sm:$0xff]  ;;  %s7127_s8 = smov 4   ;;  %s7128_s2 = smov 8   ;;  %vm5981_vm8 = vcmask 195584  }
  0x19   :  { %6399 = vmatpush3.bf16.msra.mxu1 %v6913_v1  ;;  %v6802_v20 = vpack.c.bf16 %v453_v19, %v452_v18  ;;  %v6096_v21 = vld [vmem:[%s8216_s3] ss:$0 sm:$0xff]  ;;  %v455_v29 = vld [vmem:[%s8223_s10 + $0x18] sm:$0xff]  ;;  %v457_v38 = vld [vmem:[%s8223_s10 + $0x28] sm:$0xff]  ;;  %s7129_s27 = smov 12   ;;  %s7130_s28 = smov 16  }
  0x1a   :  { %6404 = vmatprep.subr.bf16.mxu1 %v6914_v7  ;;  %6795 = vmatprep.subr.bf16.mxu0 %v6794_v13  ;;  %v6806_v34 = vpack.c.bf16 %v455_v29, %v454_v28  ;;  %v6101_v36 = vld [vmem:[%s8218_s5] ss:$0 sm:$0xff]  ;;  %v458_v46 = vld [vmem:[%s8223_s10 + $0x30] sm:$0xff]  ;;  %v459_v47 = vld [vmem:[%s8223_s10 + $0x38] sm:$0xff]  ;;  %s7131_s3 = smov 20   ;;  %s7132_s13 = smov 24  }
  0x1b   :  { %6797 = vmatpush3.bf16.msra.mxu0 %v6794_v13  ;;  %v456_v37 = vld [vmem:[%s8223_s10 + $0x20] sm:$0xff]  ;;  %v6814_v49 = vpack.c.bf16 %v459_v47, %v458_v46  ;;  %v567_v58 = vld [vmem:[%s8224_s11 + $0x8] sm:$0xff]  ;;  %s7133_s5 = smov 28   ;;  %vm5986_vm9 = vcmask 228352   ;;  %s7134_s17 = smov [#allocation5]  }
  0x1c   :  { %6401 = vmatmul.mubr.msk.bf16.vlgmr.msra.gmra.mrb[0].mxu1 %vm84_vm0, %v60_v8  ;;  %6799 = vmatprep.subr.bf16.mxu0 %v6798_v17  ;;  %v6810_v42 = vpack.c.bf16 %v457_v38, %v456_v37  ;;  %v345_v56 = vld [vmem:[%s8222_s9] sm:$0xff]  ;;  %s7119_s9 = smov 124   ;;  %s6084_s4 = sshll.u32 %s7134_s17, 4  ;;  %s6085_s4 = int_to_ptr.vmem [resolvable:$true] %s6084_s4 }
  0x1d   :  { %6405 = vmatpush3.bf16.msra.mxu1 %v6914_v7  ;;  %6408 = vmatprep.mubr.msk.bf16.mxu1 %vm84_vm0, %v6916_v10  ;;  %v566_v57 = vld [vmem:[%s8224_s11] sm:$0xff]  ;;  %s7120_s11 = smov 120   ;;  %p7095_p9 = scmp.lt.s32.totalorder %s6085_s4, %s6085_s4 }
  0x1e   :  { %6406 = vmatprep.subr.bf16.mxu1 %v6915_v9  ;;  %v6818_v59 = vpack.c.bf16 %v567_v58, %v566_v57 }
  0x1f   :  { %6801 = vmatpush3.bf16.msra.mxu0 %v6798_v17 }
  0x20   :  { %6803 = vmatprep.subr.bf16.mxu0 %v6802_v20 }
  0x21   :  { %6407 = vmatpush3.bf16.msra.mxu1 %v6915_v9 }
  0x22   :  { %6426 = vmatprep.subr.mxu1 %v345_v56 }
  0x24   :  { %6409 = vmatmul.mubr.msk.bf16.vlgmr.msra.gmra.mrb[4].mxu1 %vm84_vm0, %v6917_v14 }
  0x25   :  { %6427 = vmatpush3.msra.mxu1 %v345_v56 }
  0x26   :  { %6819 = vmatprep.subr.bf16.mxu1 %v6818_v59 }
  0xef   :  { %v6402_v22 = vpop.f32.mrb[0].mxu1 }
  0xf0   :  { %v125_v23 = vpop.f32.mrb[1].mxu1  ;;  %v7270_v26 = vadd.f32 %v6402_v22, %v6096_v21 }
  0xf1   :  { %v7268_v24 = vadd.f32 %v6096_v21, %v125_v23  ;;  %v6403_v25 = vpop.f32.mrb[2].mxu1 }
  0xf2   :  { %v128_v27 = vpop.f32.mrb[3].mxu1  ;;  %v7282_v32 = vadd.f32 %v6403_v25, %v6096_v21  ;;  %v234_v35 = vmul.f32 %v7270_v26, %v7270_v26 }
  0xf3   :  { %v7278_v30 = vadd.f32 %v6096_v21, %v128_v27  ;;  %v232_v31 = vmul.f32 %v7268_v24, %v7268_v24 }
  0xf4   :  { %v235_v41 = vmul.f32 %v7282_v32, %v7282_v32 }
  0xf5   :  { %v233_v33 = vmul.f32 %v7278_v30, %v7278_v30  ;;  %6420 = vmatprep.mubr.msk.f32.mxu0 %vm84_vm0, %v232_v31 }
  0xf7   :  { %6421 = vmatmul.mubr.msk.f32.vlgmr.msra.gmra.mrb[0].mxu0 %vm84_vm0, %v233_v33  ;;  %v6410_v39 = vpop.f32.mrb[4].mxu1 }
  0xf8   :  { %6805 = vmatpush3.bf16.msra.mxu0 %v6802_v20  ;;  %6423 = vmatprep.mubr.msk.f32.mxu0 %vm84_vm0, %v234_v35  ;;  %v217_v40 = vpop.f32.mrb[5].mxu1  ;;  %v7316_v51 = vadd.f32 %v6410_v39, %v6101_v36  ;;  %v8226_v20 = vmov 0.0  }
  0xf9   :  { %6807 = vmatprep.subr.bf16.mxu0 %v6806_v34  ;;  %v7302_v43 = vadd.f32 %v6101_v36, %v217_v40  ;;  %v6411_v44 = vpop.f32.mrb[6].mxu1 }
  0xfa   :  { %v220_v45 = vpop.f32.mrb[7].mxu1  ;;  %v7318_v52 = vadd.f32 %v6411_v44, %v6101_v36  ;;  %v450_v54 = vmul.f32 %v7316_v51, %v7316_v51 }
  0xfb   :  { %6424 = vmatmul.mubr.msk.f32.gmra.mrb[2].mxu0 %vm84_vm0, %v235_v41  ;;  %v448_v48 = vmul.f32 %v7302_v43, %v7302_v43  ;;  %v7314_v50 = vadd.f32 %v6101_v36, %v220_v45 }
  0xfc   :  { %6809 = vmatpush3.bf16.msra.mxu0 %v6806_v34  ;;  %v451_v55 = vmul.f32 %v7318_v52, %v7318_v52 }
  0xfd   :  { %6811 = vmatprep.subr.bf16.mxu0 %v6810_v42  ;;  %6450 = vmatprep.mubr.msk.f32.mxu0 %vm460_vm1, %v448_v48  ;;  %v449_v53 = vmul.f32 %v7314_v50, %v7314_v50 }
 0x100   :  { %6813 = vmatpush3.bf16.msra.mxu0 %v6810_v42 }
 0x101   :  { %6815 = vmatprep.subr.bf16.mxu0 %v6814_v49 }
 0x104   :  { %6817 = vmatpush3.bf16.msra.mxu0 %v6814_v49 }
 0x105   :  { %6476 = vmatprep.subr.mxu0 %v8226_v20 }
 0x107   :  { %6451 = vmatmul.mubr.msk.f32.vlgmr.msra.gmra.mrb[4].mxu0 %vm460_vm1, %v449_v53 }
 0x108   :  { %6453 = vmatprep.mubr.msk.f32.mxu0 %vm460_vm1, %v450_v54 }
 0x10b   :  { %6454 = vmatmul.mubr.msk.f32.gmra.mrb[6].mxu0 %vm460_vm1, %v451_v55 }
 0x10c   :  { %6478 = vmatprep.mubr.msk.f32.mxu0 %vm7118_vm4, %v8226_v20 }
 0x1ca   :  { %v6422_v60 = vpop.f32.mrb[0].mxu0 }
 0x1cb   :  { %v338_v61 = vmax.f32 %v6422_v60, 1e-24  ;;  %v318_v62 = vpop.f32.mrb[1].mxu0 }
 0x1cc   :  { %v337_v63 = vmax.f32 %v318_v62, 1e-24 }
 0x1ce   :  { %6920 = vrsqrt.f32 %v337_v63  ;;  %v6425_v0 = vpop.f32.mrb[2].mxu0 }
 0x1cf   :  { %6922 = vrsqrt.f32 %v338_v61  ;;  %v340_v1 = vmax.f32 %v6425_v0, 1e-24  ;;  %v328_v2 = vpop.f32.mrb[3].mxu0 }
 0x1d0   :  { %v339_v3 = vmax.f32 %v328_v2, 1e-24 }
 0x1d2   :  { %6924 = vrsqrt.f32 %v339_v3 }
 0x1d3   :  { %6926 = vrsqrt.f32 %v340_v1 }
 0x1d8   :  { %v6921_v4 = vpop.eup %6920 }
 0x1d9   :  { %v6923_v5 = vpop.eup %6922  ;;  %6428 = vmatprep.mubr.msk.f32.mxu1 %vm346_vm2, %v6921_v4 }
 0x1da   :  { %v6452_v6 = vpop.f32.mrb[4].mxu0  ;;  %6429 = vmatmul.mubr.msk.f32.vlgmr.msra.gmra.mrb[8].mxu1 %vm346_vm2, %v6923_v5 }
 0x1db   :  { %v559_v7 = vmax.f32 %v6452_v6, 1e-24  ;;  %v539_v8 = vpop.f32.mrb[5].mxu0  ;;  %6821 = vmatpush3.bf16.msra.mxu1 %v6818_v59 }
 0x1dc   :  { %v6925_v9 = vpop.eup %6924  ;;  %v558_v10 = vmax.f32 %v539_v8, 1e-24  ;;  %6466 = vmatprep.subr.mxu1 %v8226_v20 }
 0x1dd   :  { %v6927_v11 = vpop.eup %6926  ;;  %6928 = vrsqrt.f32 %v559_v7  ;;  %6431 = vmatprep.mubr.msk.f32.mxu1 %vm346_vm2, %v6925_v9 }
 0x1de   :  { %6930 = vrsqrt.f32 %v558_v10  ;;  %v6455_v12 = vpop.f32.mrb[6].mxu0  ;;  %6432 = vmatmul.mubr.msk.f32.gmra.mrb[10].mxu1 %vm346_vm2, %v6927_v11 }
 0x1df   :  { %v561_v13 = vmax.f32 %v6455_v12, 1e-24  ;;  %v549_v14 = vpop.f32.mrb[7].mxu0 }
 0x1e0   :  { %v560_v15 = vmax.f32 %v549_v14, 1e-24 }
 0x1e1   :  { %6932 = vrsqrt.f32 %v561_v13 }
 0x1e2   :  { %6934 = vrsqrt.f32 %v560_v15 }
 0x1e7   :  { %v6929_v16 = vpop.eup %6928 }
 0x1e8   :  { %v6931_v17 = vpop.eup %6930 }
 0x1e9   :  { %6460 = vmatprep.mubr.msk.f32.mxu1 %vm568_vm3, %v6931_v17 }
 0x1ea   :  { %6461 = vmatmul.mubr.msk.f32.vlgmr.msra.gmra.mrb[12].mxu1 %vm568_vm3, %v6929_v16 }
 0x1eb   :  { %v6933_v18 = vpop.eup %6932 }
 0x1ec   :  { %v6935_v19 = vpop.eup %6934 }
 0x1ed   :  { %6463 = vmatprep.mubr.msk.f32.mxu1 %vm568_vm3, %v6935_v19 }
 0x1ee   :  { %6464 = vmatmul.mubr.msk.f32.gmra.mrb[14].mxu1 %vm568_vm3, %v6933_v18 }
 0x1ef   :  { %6468 = vmatprep.mubr.msk.f32.mxu1 %vm7118_vm4, %v8226_v20 }
 0x2ad   :  { %v6430_v21 = vpop.f32.mrb[8].mxu1 }
 0x2ae   :  { %v7353_v22 = vmul.f32 %v6430_v21, %v7278_v30  ;;  %v425_v23 = vpop.f32.mrb[9].mxu1 }
 0x2af   :  { %v7356_v25 = vmul.f32 %v425_v23, %v7268_v24 }
 0x2b0   :  { %676 = vrot.lane.b32.xlu1 %v7353_v22, %s7119_s9 }
 0x2b1   :  { %682 = vrot.lane.b32.xlu0 %v7356_v25, %s7120_s11  ;;  %v6433_v27 = vpop.f32.mrb[10].mxu1 }
 0x2b2   :  { %v435_v28 = vpop.f32.mrb[11].mxu1  ;;  %v447_v36 = vmul.f32 %v6433_v27, %v7282_v32 }
 0x2b3   :  { %v7375_v30 = vmul.f32 %v435_v28, %v7270_v26 }
 0x2b4   :  { %684 = vrot.lane.b32.xlu1 %v7353_v22, %s7120_s11 }
 0x2b5   :  { %690 = vrot.lane.b32.xlu0 %v7356_v25, %s7121_s24 }
 0x2b8   :  { %692 = vrot.lane.b32.xlu1 %v7353_v22, %s7121_s24 }
 0x2b9   :  { %698 = vrot.lane.b32.xlu0 %v7356_v25, %s7122_s7 }
 0x2bc   :  { %700 = vrot.lane.b32.xlu1 %v7353_v22, %s7122_s7 }
 0x2bd   :  { %v6462_v24 = vpop.f32.mrb[12].mxu1  ;;  %706 = vrot.lane.b32.xlu0 %v7356_v25, %s7123_s22 }
 0x2be   :  { %v647_v29 = vpop.f32.mrb[13].mxu1  ;;  %v7388_v35 = vmul.f32 %v6462_v24, %v7314_v50 }
 0x2bf   :  { %v7378_v31 = vmul.f32 %v647_v29, %v7302_v43 }
 0x2c0   :  { %708 = vrot.lane.b32.xlu1 %v7353_v22, %s7123_s22 }
 0x2c1   :  { %v6465_v33 = vpop.f32.mrb[14].mxu1  ;;  %6467 = vmatpush3.xpose.msk.msra.mxu1 %vm790_vm5, %v7378_v31  ;;  %678 = vrot.lane.b32.xlu0 %v7375_v30, %s7119_s9 }
 0x2c2   :  { %v657_v34 = vpop.f32.mrb[15].mxu1  ;;  %6471 = vmatprep.subr.mxu1 %v8226_v20  ;;  %v669_v37 = vmul.f32 %v6465_v33, %v7318_v52 }
 0x2c3   :  { %v7391_v26 = vmul.f32 %v657_v34, %v7316_v51 }
 0x2c4   :  { %6469 = vmatmul.mubr.msk.f32.vlgmr.msra.gmra.mrb[16].mxu1 %vm790_vm5, %v7356_v25  ;;  %674 = vrot.lane.b32.xlu1 %v7356_v25, %s7119_s9 }
 0x2c5   :  { %6472 = vmatpush3.xpose.msk.msra.mxu1 %vm790_vm5, %v7388_v35  ;;  %6477 = vmatpush3.xpose.msk.msra.mxu0 %vm790_vm5, %v7391_v26 }
 0x2c6   :  { %686 = vrot.lane.b32.xlu0 %v7375_v30, %s7120_s11  ;;  %6473 = vmatprep.mubr.msk.f32.mxu1 %vm7118_vm4, %v8226_v20 }
 0x2c7   :  { %6481 = vmatprep.subr.mxu1 %v8226_v20  ;;  %6486 = vmatprep.subr.mxu0 %v8226_v20 }
 0x2c8   :  { %6474 = vmatmul.mubr.msk.f32.vlgmr.msra.gmra.mrb[18].mxu1 %vm790_vm5, %v7353_v22  ;;  %6479 = vmatmul.mubr.msk.f32.vlgmr.msra.gmra.mrb[8].mxu0 %vm790_vm5, %v7375_v30 }
 0x2c9   :  { %680 = vrot.lane.b32.xlu1 %v447_v36, %s7119_s9  ;;  %6482 = vmatpush3.xpose.msk.msra.mxu1 %vm790_vm5, %v669_v37 }
 0x2ca   :  { %694 = vrot.lane.b32.xlu0 %v7375_v30, %s7121_s24  ;;  %6483 = vmatprep.mubr.msk.f32.mxu1 %vm7118_vm4, %v8226_v20 }
 0x2cb   :  { %6491 = vmatprep.subr.mxu1 %v8226_v20  ;;  %6488 = vmatprep.mubr.msk.f32.mxu0 %vm7118_vm4, %v8226_v20 }
 0x2cc   :  { %6484 = vmatmul.mubr.msk.f32.vlgmr.msra.gmra.mrb[20].mxu1 %vm790_vm5, %v447_v36 }
 0x2cd   :  { %688 = vrot.lane.b32.xlu1 %v447_v36, %s7120_s11  ;;  %6493 = vmatprep.mubr.msk.f32.mxu1 %vm7118_vm4, %v8226_v20 }
 0x2ce   :  { %702 = vrot.lane.b32.xlu0 %v7375_v30, %s7122_s7 }
 0x2d1   :  { %696 = vrot.lane.b32.xlu1 %v447_v36, %s7121_s24 }
 0x2d2   :  { %736 = vrot.lane.b32.xlu0 %v7388_v35, %s7119_s9 }
 0x2d5   :  { %704 = vrot.lane.b32.xlu1 %v447_v36, %s7122_s7 }
 0x2d6   :  { %734 = vrot.lane.b32.xlu0 %v7378_v31, %s7119_s9 }
 0x2d9   :  { %744 = vrot.lane.b32.xlu1 %v7388_v35, %s7120_s11 }
 0x2da   :  { %742 = vrot.lane.b32.xlu0 %v7378_v31, %s7120_s11 }
 0x2dd   :  { %752 = vrot.lane.b32.xlu1 %v7388_v35, %s7121_s24 }
 0x2de   :  { %750 = vrot.lane.b32.xlu0 %v7378_v31, %s7121_s24 }
 0x2e1   :  { %760 = vrot.lane.b32.xlu1 %v7388_v35, %s7122_s7 }
 0x2e2   :  { %758 = vrot.lane.b32.xlu0 %v7378_v31, %s7122_s7 }
 0x2e5   :  { %768 = vrot.lane.b32.xlu1 %v7388_v35, %s7123_s22 }
 0x2e6   :  { %766 = vrot.lane.b32.xlu0 %v7378_v31, %s7123_s22 }
 0x2e9   :  { %740 = vrot.lane.b32.xlu1 %v669_v37, %s7119_s9 }
 0x2ea   :  { %738 = vrot.lane.b32.xlu0 %v7391_v26, %s7119_s9  ;;  %s7090_s9 = scalar_lea.vmem %s6085_s4, 512 }
 0x2eb   :  { %p7091_p8 = scmp.ne.s32.totalorder %s6085_s4, %s7090_s9  ;;  %p7096_p10 = scmp.lt.s32.totalorder %s7090_s9, %s7090_s9 }
 0x2ed   :  { %748 = vrot.lane.b32.xlu1 %v669_v37, %s7120_s11  ;;  %p7097_p11 = por %p7096_p10, %p7095_p9 }
 0x2ee   :  { %710 = vrot.lane.b32.xlu0 %v7375_v30, %s7123_s22 }
 0x2ef   :  { %p7098_p12 = pnand %p7097_p11, %p7091_p8 }
 0x2f1   :  { %756 = vrot.lane.b32.xlu1 %v669_v37, %s7121_s24 }
 0x2f2   :  { %746 = vrot.lane.b32.xlu0 %v7391_v26, %s7120_s11 }
 0x2f5   :  { %764 = vrot.lane.b32.xlu1 %v669_v37, %s7122_s7 }
 0x2f6   :  { %774 = vrot.lane.b32.xlu0 %v7378_v31, %s7124_s1 }
 0x2f9   :  { %772 = vrot.lane.b32.xlu1 %v669_v37, %s7123_s22 }
 0x2fa   :  { %754 = vrot.lane.b32.xlu0 %v7391_v26, %s7121_s24 }
 0x2fd   :  { %712 = vrot.lane.b32.xlu1 %v447_v36, %s7123_s22 }
 0x2fe   :  { %714 = vrot.lane.b32.xlu0 %v7356_v25, %s7124_s1 }
 0x301   :  { %776 = vrot.lane.b32.xlu1 %v7388_v35, %s7124_s1 }
 0x302   :  { %762 = vrot.lane.b32.xlu0 %v7391_v26, %s7122_s7 }
 0x305   :  { %716 = vrot.lane.b32.xlu1 %v7353_v22, %s7124_s1 }
 0x306   :  { %718 = vrot.lane.b32.xlu0 %v7375_v30, %s7124_s1 }
 0x309   :  { %780 = vrot.lane.b32.xlu1 %v669_v37, %s7124_s1 }
 0x30a   :  { %770 = vrot.lane.b32.xlu0 %v7391_v26, %s7123_s22 }
 0x30d   :  { %720 = vrot.lane.b32.xlu1 %v447_v36, %s7124_s1 }
 0x30e   :  { %782 = vrot.lane.b32.xlu0 %v7378_v31, %s7125_s25 }
 0x311   :  { %784 = vrot.lane.b32.xlu1 %v7388_v35, %s7125_s25 }
 0x312   :  { %778 = vrot.lane.b32.xlu0 %v7391_v26, %s7124_s1 }
 0x315   :  { %724 = vrot.lane.b32.xlu1 %v7353_v22, %s7125_s25 }
 0x316   :  { %722 = vrot.lane.b32.xlu0 %v7356_v25, %s7125_s25 }
 0x319   :  { %788 = vrot.lane.b32.xlu1 %v669_v37, %s7125_s25 }
 0x31a   :  { %786 = vrot.lane.b32.xlu0 %v7391_v26, %s7125_s25 }
 0x31d   :  { %728 = vrot.lane.b32.xlu1 %v447_v36, %s7125_s25 }
 0x31e   :  { %726 = vrot.lane.b32.xlu0 %v7375_v30, %s7125_s25 }
 0x321   :  { %3415 = vrot.lane.b32.xlu1 %v7378_v31, %s7126_s26 }
 0x322   :  { %3491 = vrot.lane.b32.xlu0 %v7388_v35, %s7126_s26  ;;  %v677_v32 = vpop.permute.xlu1 %676 }
 0x323   :  { %v683_v38 = vpop.permute.xlu0 %682 }
 0x325   :  { %3567 = vrot.lane.b32.xlu1 %v7391_v26, %s7126_s26 }
 0x326   :  { %3643 = vrot.lane.b32.xlu0 %v669_v37, %s7126_s26  ;;  %v685_v39 = vpop.permute.xlu1 %684 }
 0x327   :  { %v7487_v40 = vpop.permute.xlu0 %690 }
 0x32a   :  { %v7489_v41 = vpop.permute.xlu1 %692 }
 0x32b   :  { %v7491_v42 = vpop.permute.xlu0 %698 }
 0x32e   :  { %v7493_v43 = vpop.permute.xlu1 %700 }
 0x32f   :  { %v7495_v44 = vpop.permute.xlu0 %706 }
 0x332   :  { %v7497_v45 = vpop.permute.xlu1 %708 }
 0x333   :  { %v679_v46 = vpop.permute.xlu0 %678 }
 0x336   :  { %v675_v47 = vpop.permute.xlu1 %674 }
 0x338   :  { %v687_v48 = vpop.permute.xlu0 %686 }
 0x33b   :  { %v681_v49 = vpop.permute.xlu1 %680 }
 0x33c   :  { %v7499_v50 = vpop.permute.xlu0 %694 }
 0x33f   :  { %v689_v51 = vpop.permute.xlu1 %688 }
 0x340   :  { %v7501_v52 = vpop.permute.xlu0 %702 }
 0x343   :  { %v7503_v53 = vpop.permute.xlu1 %696 }
 0x344   :  { %v737_v54 = vpop.permute.xlu0 %736 }
 0x345   :  { %6492 = vmatpush3.xpose.msk.msra.mxu1 %vm790_vm5, %v737_v54  ;;  %3795 = vrot.lane.b32.xlu0 %v737_v54, %s7126_s26 }
 0x346   :  { %6501 = vmatprep.subr.mxu1 %v8226_v20 }
 0x347   :  { %v7508_v55 = vpop.permute.xlu1 %704 }
 0x348   :  { %6494 = vmatmul.mubr.msk.f32.vlgmr.msra.gmra.mrb[22].mxu1 %vm790_vm5, %v677_v32  ;;  %v7511_v56 = vpop.permute.xlu0 %734 }
 0x349   :  { %6487 = vmatpush3.xpose.msk.msra.mxu0 %vm790_vm5, %v7511_v56  ;;  %6503 = vmatprep.mubr.msk.f32.mxu1 %vm7118_vm4, %v8226_v20 }
 0x34a   :  { %6496 = vmatprep.subr.mxu0 %v8226_v20 }
 0x34b   :  { %v745_v57 = vpop.permute.xlu1 %744 }
 0x34c   :  { %4099 = vrot.lane.b32.xlu0 %v745_v57, %s7126_s26  ;;  %v7519_v58 = vpop.permute.xlu0 %742  ;;  %6489 = vmatmul.mubr.msk.f32.vlgmr.msra.gmra.mrb[10].mxu0 %vm790_vm5, %v675_v47 }
 0x34d   :  { %6498 = vmatprep.mubr.msk.f32.mxu0 %vm7118_vm4, %v8226_v20 }
 0x34f   :  { %v753_v59 = vpop.permute.xlu1 %752 }
 0x350   :  { %4403 = vrot.lane.b32.xlu0 %v753_v59, %s7126_s26  ;;  %v7525_v60 = vpop.permute.xlu0 %750 }
 0x353   :  { %v761_v61 = vpop.permute.xlu1 %760 }
 0x354   :  { %4707 = vrot.lane.b32.xlu0 %v761_v61, %s7126_s26  ;;  %v7528_v62 = vpop.permute.xlu0 %758 }
 0x357   :  { %v7530_v63 = vpop.permute.xlu1 %768 }
 0x358   :  { %5011 = vrot.lane.b32.xlu1 %v7530_v63, %s7126_s26  ;;  %v7534_v0 = vpop.permute.xlu0 %766 }
 0x35b   :  { %v7536_v1 = vpop.permute.xlu1 %740 }
 0x35c   :  { %6502 = vmatpush3.xpose.msk.msra.mxu1 %vm790_vm5, %v7536_v1  ;;  %v7540_v2 = vpop.permute.xlu0 %738 }
 0x35d   :  { %6497 = vmatpush3.xpose.msk.msra.mxu0 %vm790_vm5, %v7540_v2  ;;  %6511 = vmatprep.subr.mxu1 %v8226_v20 }
 0x35e   :  { %6506 = vmatprep.subr.mxu0 %v8226_v20 }
 0x35f   :  { %v7546_v3 = vpop.permute.xlu1 %748  ;;  %6504 = vmatmul.mubr.msk.f32.vlgmr.msra.gmra.mrb[24].mxu1 %vm790_vm5, %v681_v49 }
 0x360   :  { %6512 = vmatpush3.xpose.msk.msra.mxu1 %vm790_vm5, %v745_v57  ;;  %v7550_v4 = vpop.permute.xlu0 %710  ;;  %6499 = vmatmul.mubr.msk.f32.vlgmr.msra.gmra.mrb[12].mxu0 %vm790_vm5, %v679_v46 }
 0x361   :  { %6507 = vmatpush3.xpose.msk.msra.mxu0 %vm790_vm5, %v7519_v58  ;;  %6513 = vmatprep.mubr.msk.f32.mxu1 %vm7118_vm4, %v8226_v20 }
 0x362   :  { %6508 = vmatprep.mubr.msk.f32.mxu0 %vm7118_vm4, %v8226_v20  ;;  %6521 = vmatprep.subr.mxu1 %v8226_v20 }
 0x363   :  { %v7560_v5 = vpop.permute.xlu1 %756  ;;  %6514 = vmatmul.mubr.msk.f32.vlgmr.msra.gmra.mrb[26].mxu1 %vm790_vm5, %v685_v39  ;;  %6516 = vmatprep.subr.mxu0 %v8226_v20 }
 0x364   :  { %6522 = vmatpush3.xpose.msk.msra.mxu1 %vm790_vm5, %v7546_v3  ;;  %v7566_v6 = vpop.permute.xlu0 %746  ;;  %6509 = vmatmul.mubr.msk.f32.vlgmr.msra.gmra.mrb[14].mxu0 %vm790_vm5, %v683_v38 }
 0x365   :  { %6517 = vmatpush3.xpose.msk.msra.mxu0 %vm790_vm5, %v7566_v6  ;;  %6523 = vmatprep.mubr.msk.f32.mxu1 %vm7118_vm4, %v8226_v20 }
 0x366   :  { %6518 = vmatprep.mubr.msk.f32.mxu0 %vm7118_vm4, %v8226_v20  ;;  %6531 = vmatprep.subr.mxu1 %v8226_v20 }
 0x367   :  { %v7576_v7 = vpop.permute.xlu1 %764  ;;  %6524 = vmatmul.mubr.msk.f32.vlgmr.msra.gmra.mrb[28].mxu1 %vm790_vm5, %v689_v51  ;;  %6526 = vmatprep.subr.mxu0 %v8226_v20 }
 0x368   :  { %6532 = vmatpush3.xpose.msk.msra.mxu1 %vm790_vm5, %v753_v59  ;;  %v7581_v8 = vpop.permute.xlu0 %774  ;;  %6519 = vmatmul.mubr.msk.f32.vlgmr.msra.gmra.mrb[16].mxu0 %vm790_vm5, %v687_v48 }
 0x369   :  { %5239 = vrot.lane.b32.xlu0 %v7581_v8, %s7126_s26  ;;  %6527 = vmatpush3.xpose.msk.msra.mxu0 %vm790_vm5, %v7525_v60 }
 0x36a   :  { %6533 = vmatprep.mubr.msk.f32.mxu1 %vm7118_vm4, %v8226_v20  ;;  %6528 = vmatprep.mubr.msk.f32.mxu0 %vm7118_vm4, %v8226_v20 }
 0x36b   :  { %v7592_v9 = vpop.permute.xlu1 %772  ;;  %6534 = vmatmul.mubr.msk.f32.vlgmr.msra.gmra.mrb[30].mxu1 %vm790_vm5, %v7489_v41  ;;  %6541 = vmatprep.subr.mxu1 %v8226_v20 }
 0x36c   :  { %6542 = vmatpush3.xpose.msk.msra.mxu1 %vm790_vm5, %v7560_v5  ;;  %v7599_v10 = vpop.permute.xlu0 %754  ;;  %6529 = vmatmul.mubr.msk.f32.vlgmr.msra.gmra.mrb[18].mxu0 %vm790_vm5, %v7487_v40 }
 0x36d   :  { %6536 = vmatprep.subr.mxu0 %v8226_v20  ;;  %6543 = vmatprep.mubr.msk.f32.mxu1 %vm7118_vm4, %v8226_v20 }
 0x36e   :  { %6537 = vmatpush3.xpose.msk.msra.mxu0 %vm790_vm5, %v7599_v10  ;;  %6538 = vmatprep.mubr.msk.f32.mxu0 %vm7118_vm4, %v8226_v20 }
 0x36f   :  { %v713_v11 = vpop.permute.xlu1 %712  ;;  %6544 = vmatmul.mubr.msk.f32.vlgmr.msra.gmra.mrb[32].mxu1 %vm790_vm5, %v7503_v53  ;;  %6551 = vmatprep.subr.mxu1 %v8226_v20 }
 0x370   :  { %6552 = vmatpush3.xpose.msk.msra.mxu1 %vm790_vm5, %v761_v61  ;;  %v715_v12 = vpop.permute.xlu0 %714  ;;  %6546 = vmatprep.subr.mxu0 %v8226_v20 }
 0x371   :  { %6539 = vmatmul.mubr.msk.f32.vlgmr.msra.gmra.mrb[20].mxu0 %vm790_vm5, %v7499_v50  ;;  %6553 = vmatprep.mubr.msk.f32.mxu1 %vm7118_vm4, %v8226_v20 }
 0x372   :  { %6547 = vmatpush3.xpose.msk.msra.mxu0 %vm790_vm5, %v7528_v62  ;;  %6548 = vmatprep.mubr.msk.f32.mxu0 %vm7118_vm4, %v8226_v20 }
 0x373   :  { %v777_v13 = vpop.permute.xlu1 %776  ;;  %6554 = vmatmul.mubr.msk.f32.vlgmr.msra.gmra.mrb[34].mxu1 %vm790_vm5, %v7493_v43  ;;  %6561 = vmatprep.subr.mxu1 %v8226_v20 }
 0x374   :  { %5315 = vrot.lane.b32.xlu1 %v777_v13, %s7126_s26  ;;  %6562 = vmatpush3.xpose.msk.msra.mxu1 %vm790_vm5, %v7576_v7  ;;  %v7629_v14 = vpop.permute.xlu0 %762 }
 0x375   :  { %6549 = vmatmul.mubr.msk.f32.vlgmr.msra.gmra.mrb[22].mxu0 %vm790_vm5, %v7491_v42  ;;  %6556 = vmatprep.subr.mxu0 %v8226_v20 }
 0x376   :  { %6557 = vmatpush3.xpose.msk.msra.mxu0 %vm790_vm5, %v7629_v14  ;;  %6563 = vmatprep.mubr.msk.f32.mxu1 %vm7118_vm4, %v8226_v20 }
 0x377   :  { %v717_v15 = vpop.permute.xlu1 %716  ;;  %6558 = vmatprep.mubr.msk.f32.mxu0 %vm7118_vm4, %v8226_v20  ;;  %6564 = vmatmul.mubr.msk.f32.vlgmr.msra.gmra.mrb[36].mxu1 %vm790_vm5, %v7508_v55 }
 0x378   :  { %6571 = vmatprep.subr.mxu1 %v8226_v20  ;;  %v719_v16 = vpop.permute.xlu0 %718  ;;  %6566 = vmatprep.subr.mxu0 %v8226_v20 }
 0x379   :  { %6572 = vmatpush3.xpose.msk.msra.mxu1 %vm790_vm5, %v7530_v63  ;;  %6559 = vmatmul.mubr.msk.f32.vlgmr.msra.gmra.mrb[24].mxu0 %vm790_vm5, %v7501_v52 }
 0x37a   :  { %6567 = vmatpush3.xpose.msk.msra.mxu0 %vm790_vm5, %v7534_v0  ;;  %6573 = vmatprep.mubr.msk.f32.mxu1 %vm7118_vm4, %v8226_v20 }
 0x37b   :  { %v7652_v17 = vpop.permute.xlu1 %780  ;;  %6568 = vmatprep.mubr.msk.f32.mxu0 %vm7118_vm4, %v8226_v20  ;;  %6581 = vmatprep.subr.mxu1 %v8226_v20 }
 0x37c   :  { %6574 = vmatmul.mubr.msk.f32.vlgmr.msra.gmra.mrb[38].mxu1 %vm790_vm5, %v7497_v45  ;;  %v7659_v18 = vpop.permute.xlu0 %770  ;;  %6576 = vmatprep.subr.mxu0 %v8226_v20 }
 0x37d   :  { %6582 = vmatpush3.xpose.msk.msra.mxu1 %vm790_vm5, %v7592_v9  ;;  %6569 = vmatmul.mubr.msk.f32.vlgmr.msra.gmra.mrb[26].mxu0 %vm790_vm5, %v7495_v44 }
 0x37e   :  { %6577 = vmatpush3.xpose.msk.msra.mxu0 %vm790_vm5, %v7659_v18  ;;  %6583 = vmatprep.mubr.msk.f32.mxu1 %vm7118_vm4, %v8226_v20 }
 0x37f   :  { %v721_v19 = vpop.permute.xlu1 %720  ;;  %6578 = vmatprep.mubr.msk.f32.mxu0 %vm7118_vm4, %v8226_v20  ;;  %6591 = vmatprep.subr.mxu1 %v8226_v20 }
 0x380   :  { %6584 = vmatmul.mubr.msk.f32.vlgmr.msra.gmra.mrb[40].mxu1 %vm790_vm5, %v713_v11  ;;  %v783_v21 = vpop.permute.xlu0 %782  ;;  %6586 = vmatprep.subr.mxu0 %v8226_v20 }
 0x381   :  { %6592 = vmatpush3.xpose.msk.msra.mxu1 %vm790_vm5, %v777_v13  ;;  %6579 = vmatmul.mubr.msk.f32.vlgmr.msra.gmra.mrb[28].mxu0 %vm790_vm5, %v7550_v4 }
 0x382   :  { %5543 = vrot.lane.b32.xlu0 %v783_v21, %s7126_s26  ;;  %6587 = vmatpush3.xpose.msk.msra.mxu0 %vm790_vm5, %v7581_v8 }
 0x383   :  { %6593 = vmatprep.mubr.msk.f32.mxu1 %vm7118_vm4, %v8226_v20  ;;  %v785_v22 = vpop.permute.xlu1 %784  ;;  %6588 = vmatprep.mubr.msk.f32.mxu0 %vm7118_vm4, %v8226_v20 }
 0x384   :  { %6594 = vmatmul.mubr.msk.f32.vlgmr.msra.gmra.mrb[42].mxu1 %vm790_vm5, %v717_v15  ;;  %6601 = vmatprep.subr.mxu1 %v8226_v20  ;;  %v779_v23 = vpop.permute.xlu0 %778 }
 0x385   :  { %5619 = vrot.lane.b32.xlu1 %v785_v22, %s7126_s26  ;;  %6602 = vmatpush3.xpose.msk.msra.mxu1 %vm790_vm5, %v7652_v17 }
 0x386   :  { %6589 = vmatmul.mubr.msk.f32.vlgmr.msra.gmra.mrb[30].mxu0 %vm790_vm5, %v715_v12  ;;  %6596 = vmatprep.subr.mxu0 %v8226_v20 }
 0x387   :  { %3947 = vrot.lane.b32.xlu0 %v7536_v1, %s7126_s26  ;;  %6597 = vmatpush3.xpose.msk.msra.mxu0 %vm790_vm5, %v779_v23  ;;  %v725_v25 = vpop.permute.xlu1 %724 }
 0x388   :  { %6603 = vmatprep.mubr.msk.f32.mxu1 %vm7118_vm4, %v8226_v20  ;;  %6598 = vmatprep.mubr.msk.f32.mxu0 %vm7118_vm4, %v8226_v20  ;;  %v723_v27 = vpop.permute.xlu0 %722 }
 0x389   :  { %6604 = vmatmul.mubr.msk.f32.vlgmr.msra.gmra.mrb[44].mxu1 %vm790_vm5, %v721_v19  ;;  %6611 = vmatprep.subr.mxu1 %v8226_v20 }
 0x38a   :  { %6612 = vmatpush3.xpose.msk.msra.mxu1 %vm790_vm5, %v785_v22  ;;  %3719 = vrot.lane.b32.xlu1 %v7511_v56, %s7126_s26 }
 0x38b   :  { %6599 = vmatmul.mubr.msk.f32.vlgmr.msra.gmra.mrb[32].mxu0 %vm790_vm5, %v719_v16  ;;  %6606 = vmatprep.subr.mxu0 %v8226_v20  ;;  %v7706_v28 = vpop.permute.xlu1 %788 }
 0x38c   :  { %4251 = vrot.lane.b32.xlu0 %v7546_v3, %s7126_s26  ;;  %6607 = vmatpush3.xpose.msk.msra.mxu0 %vm790_vm5, %v783_v21  ;;  %v7711_v24 = vpop.permute.xlu0 %786 }
 0x38d   :  { %6613 = vmatprep.mubr.msk.f32.mxu1 %vm7118_vm4, %v8226_v20  ;;  %6608 = vmatprep.mubr.msk.f32.mxu0 %vm7118_vm4, %v8226_v20 }
 0x38e   :  { %6614 = vmatmul.mubr.msk.f32.vlgmr.msra.gmra.mrb[46].mxu1 %vm790_vm5, %v725_v25  ;;  %6621 = vmatprep.subr.mxu1 %v8226_v20 }
 0x38f   :  { %6622 = vmatpush3.xpose.msk.msra.mxu1 %vm790_vm5, %v7706_v28  ;;  %4023 = vrot.lane.b32.xlu1 %v7519_v58, %s7126_s26  ;;  %v729_v29 = vpop.permute.xlu1 %728 }
 0x390   :  { %6609 = vmatmul.mubr.msk.f32.vlgmr.msra.gmra.mrb[34].mxu0 %vm790_vm5, %v723_v27  ;;  %6616 = vmatprep.subr.mxu0 %v8226_v20  ;;  %v727_v30 = vpop.permute.xlu0 %726 }
 0x391   :  { %4555 = vrot.lane.b32.xlu0 %v7560_v5, %s7126_s26  ;;  %6617 = vmatpush3.xpose.msk.msra.mxu0 %vm790_vm5, %v7711_v24 }
 0x392   :  { %6623 = vmatprep.mubr.msk.f32.mxu1 %vm7118_vm4, %v8226_v20  ;;  %6618 = vmatprep.mubr.msk.f32.mxu0 %vm7118_vm4, %v8226_v20 }
 0x393   :  { %6624 = vmatmul.mubr.msk.f32.vlgmr.msra.gmra.mrb[48].mxu1 %vm790_vm5, %v729_v29  ;;  %4327 = vrot.lane.b32.xlu1 %v7525_v60, %s7126_s26  ;;  %v3416_v31 = vpop.permute.xlu1 %3415 }
 0x394   :  { %6619 = vmatmul.mubr.msk.f32.vlgmr.msra.gmra.mrb[36].mxu0 %vm790_vm5, %v727_v30  ;;  %6626 = vmatprep.subr.mxu0 %v8226_v20  ;;  %v3492_v33 = vpop.permute.xlu0 %3491 }
 0x395   :  { %4859 = vrot.lane.b32.xlu0 %v7576_v7, %s7126_s26  ;;  %6631 = vmatprep.subr.mxu1 %v8226_v20 }
 0x396   :  { %6627 = vmatpush3.msra.mxu0 %v3416_v31  ;;  %6632 = vmatpush3.msra.mxu1 %v3492_v33 }
 0x397   :  { %4631 = vrot.lane.b32.xlu1 %v7528_v62, %s7126_s26  ;;  %v861_v34 = vpop.f32.mrb[16].mxu1  ;;  %6628 = vmatprep.mubr.msk.f32.mxu0 %vm7118_vm4, %v8226_v20  ;;  %v7788_v59 = vpop.permute.xlu1 %3567 }
 0x398   :  { %v6470_v35 = vpop.f32.mrb[17].mxu1  ;;  %6636 = vmatprep.subr.mxu0 %v8226_v20  ;;  %6633 = vmatprep.mubr.msk.f32.mxu1 %vm7118_vm4, %v8226_v20  ;;  %v3159_v40 = vmul.f32 0.5, %v861_v34  ;;  %v7782_v56 = vpop.permute.xlu0 %3643 }
 0x399   :  { %5087 = vrot.lane.b32.xlu0 %v7659_v18, %s7126_s26  ;;  %6641 = vmatprep.subr.mxu1 %v8226_v20 }
 0x39a   :  { %v3191_v41 = vmul.f32 1.442695, %v3159_v40 }
 0x39b   :  { %4935 = vrot.lane.b32.xlu1 %v7534_v0, %s7126_s26  ;;  %v935_v26 = vpop.f32.mrb[18].mxu1  ;;  %v1009_v36 = vpop.f32.mrb[8].mxu0 }
 0x39c   :  { %v6475_v37 = vpop.f32.mrb[19].mxu1  ;;  %v6480_v32 = vpop.f32.mrb[9].mxu0  ;;  %v3161_v42 = vmul.f32 0.5, %v1009_v36  ;;  %6936 = vpow2.f32 %v3191_v41  ;;  %v3160_v51 = vmul.f32 0.5, %v935_v26 }
 0x39d   :  { %5391 = vrot.lane.b32.xlu0 %v779_v23, %s7126_s26 }
 0x39e   :  { %v3195_v43 = vmul.f32 1.442695, %v3161_v42  ;;  %v3193_v53 = vmul.f32 1.442695, %v3160_v51 }
 0x39f   :  { %5163 = vrot.lane.b32.xlu1 %v7592_v9, %s7126_s26  ;;  %v1083_v38 = vpop.f32.mrb[20].mxu1 }
 0x3a0   :  { %v6485_v39 = vpop.f32.mrb[21].mxu1  ;;  %v3162_v44 = vmul.f32 0.5, %v1083_v38  ;;  %6938 = vpow2.f32 %v3195_v43 }
 0x3a2   :  { %v3197_v45 = vmul.f32 1.442695, %v3162_v44 }
 0x3a3   :  { %5467 = vrot.lane.b32.xlu1 %v7652_v17, %s7126_s26 }
 0x3a4   :  { %6940 = vpow2.f32 %v3197_v45 }
 0x3a5   :  { %6942 = vpow2.f32 %v3193_v53 }
 0x3a6   :  { %v7766_v46 = vpop.eup %6936 }
 0x3a7   :  { %3871 = vrot.lane.b32.xlu1 %v7540_v2, %s7126_s26  ;;  %v3255_v47 = vsel %vm346_vm2, %v7766_v46, 0.0 }
 0x3aa   :  { %v7770_v48 = vpop.eup %6938 }
 0x3ab   :  { %4175 = vrot.lane.b32.xlu1 %v7566_v6, %s7126_s26  ;;  %v3261_v49 = vsel %vm346_vm2, %v7770_v48, 0.0 }
 0x3ae   :  { %v7774_v50 = vpop.eup %6940 }
 0x3af   :  { %4479 = vrot.lane.b32.xlu1 %v7599_v10, %s7126_s26  ;;  %v3264_v52 = vsel %vm346_vm2, %v7774_v50, 0.0  ;;  %v7778_v54 = vpop.eup %6942 }
 0x3b0   :  { %v3258_v55 = vsel %vm346_vm2, %v7778_v54, 0.0 }
 0x3b3   :  { %4783 = vrot.lane.b32.xlu1 %v7629_v14, %s7126_s26 }
 0x3b7   :  { %v7784_v57 = vpop.permute.xlu0 %3795 }
 0x3bc   :  { %3256 = vadd.xlane.f32.xlu0 %v3255_v47 }
 0x3be   :  { %v7786_v58 = vpop.permute.xlu0 %4099 }
 0x3c0   :  { %3262 = vadd.xlane.f32.xlu0 %v3261_v49 }
 0x3c2   :  { %v7790_v60 = vpop.permute.xlu0 %4403 }
 0x3c4   :  { %3265 = vadd.xlane.f32.xlu0 %v3264_v52 }
 0x3c6   :  { %v7794_v62 = vpop.permute.xlu0 %4707 }
 0x3ca   :  { %v7792_v61 = vpop.permute.xlu1 %5011 }
 0x3d7   :  { %3259 = vadd.xlane.f32.xlu1 %v3258_v55 }
 0x3db   :  { %v7798_v0 = vpop.permute.xlu0 %5239 }
 0x3e6   :  { %v7796_v63 = vpop.permute.xlu1 %5315 }
 0x3f4   :  { %v7802_v7 = vpop.permute.xlu0 %5543 }
 0x3f5   :  { %8228 = vst [vmem:[#allocation8_spill] sm:$0xff] %v7802_v7 }
 0x3f7   :  { %v7800_v2 = vpop.permute.xlu1 %5619 }
 0x3f9   :  { %v7806_v12 = vpop.permute.xlu0 %3947 }
 0x3fc   :  { %v7804_v10 = vpop.permute.xlu1 %3719 }
 0x3fe   :  { %v7814_v16 = vpop.permute.xlu0 %4251 }
 0x401   :  { %v7808_v13 = vpop.permute.xlu1 %4023 }
 0x403   :  { %v7822_v21 = vpop.permute.xlu0 %4555 }
 0x405   :  { %v7818_v18 = vpop.permute.xlu1 %4327 }
 0x407   :  { %v7826_v32 = vpop.permute.xlu0 %4859 }
 0x409   :  { %v7824_v29 = vpop.permute.xlu1 %4631 }
 0x40b   :  { %v7830_v53 = vpop.permute.xlu0 %5087 }
 0x40d   :  { %v7828_v41 = vpop.permute.xlu1 %4935 }
 0x41b   :  { %v1231_v1 = vpop.f32.mrb[22].mxu1 }
 0x41c   :  { %v3164_v3 = vmul.f32 0.5, %v1231_v1  ;;  %v6495_v4 = vpop.f32.mrb[23].mxu1 }
 0x41e   :  { %v3201_v5 = vmul.f32 1.442695, %v3164_v3 }
 0x41f   :  { %v1157_v6 = vpop.f32.mrb[10].mxu0 }
 0x420   :  { %6944 = vpow2.f32 %v3201_v5  ;;  %v3163_v8 = vmul.f32 0.5, %v1157_v6  ;;  %v6490_v9 = vpop.f32.mrb[11].mxu0  ;;  %v7832_v6 = vpop.permute.xlu1 %5163 }
 0x422   :  { %v3199_v11 = vmul.f32 1.442695, %v3163_v8 }
 0x424   :  { %6946 = vpow2.f32 %v3199_v11 }
 0x42a   :  { %v7810_v14 = vpop.eup %6944 }
 0x42b   :  { %v3270_v15 = vsel %vm346_vm2, %v7810_v14, 0.0 }
 0x42c   :  { %3271 = vadd.xlane.f32.xlu0 %v3270_v15 }
 0x42e   :  { %v7816_v17 = vpop.eup %6946 }
 0x42f   :  { %v3267_v19 = vsel %vm346_vm2, %v7816_v17, 0.0 }
 0x430   :  { %3268 = vadd.xlane.f32.xlu1 %v3267_v19 }
 0x432   :  { %v1379_v22 = vpop.f32.mrb[24].mxu1 }
 0x433   :  { %v3166_v23 = vmul.f32 0.5, %v1379_v22  ;;  %v1305_v25 = vpop.f32.mrb[12].mxu0  ;;  %v6505_v27 = vpop.f32.mrb[25].mxu1 }
 0x434   :  { %v3165_v30 = vmul.f32 0.5, %v1305_v25  ;;  %v6500_v31 = vpop.f32.mrb[13].mxu0 }
 0x435   :  { %v3205_v33 = vmul.f32 1.442695, %v3166_v23 }
 0x436   :  { %v3203_v34 = vmul.f32 1.442695, %v3165_v30  ;;  %v1527_v35 = vpop.f32.mrb[26].mxu1 }
 0x437   :  { %6948 = vpow2.f32 %v3205_v33  ;;  %v3168_v26 = vmul.f32 0.5, %v1527_v35  ;;  %v1453_v36 = vpop.f32.mrb[14].mxu0  ;;  %v6515_v37 = vpop.f32.mrb[27].mxu1 }
 0x438   :  { %6950 = vpow2.f32 %v3203_v34  ;;  %v3167_v38 = vmul.f32 0.5, %v1453_v36  ;;  %v6510_v39 = vpop.f32.mrb[15].mxu0  ;;  %v7844_v35 = vpop.permute.xlu0 %5391 }
 0x439   :  { %v3209_v40 = vmul.f32 1.442695, %v3168_v26  ;;  %v7848_v39 = vpop.permute.xlu1 %5467 }
 0x43a   :  { %v3207_v42 = vmul.f32 1.442695, %v3167_v38  ;;  %v1675_v43 = vpop.f32.mrb[28].mxu1 }
 0x43b   :  { %6952 = vpow2.f32 %v3209_v40  ;;  %v3170_v44 = vmul.f32 0.5, %v1675_v43  ;;  %v1601_v45 = vpop.f32.mrb[16].mxu0  ;;  %v6525_v47 = vpop.f32.mrb[29].mxu1 }
 0x43c   :  { %6954 = vpow2.f32 %v3207_v42  ;;  %v3169_v49 = vmul.f32 0.5, %v1601_v45  ;;  %v6520_v51 = vpop.f32.mrb[17].mxu0 }
 0x43d   :  { %v3213_v52 = vmul.f32 1.442695, %v3170_v44 }
 0x43e   :  { %v3211_v55 = vmul.f32 1.442695, %v3169_v49  ;;  %v1823_v1 = vpop.f32.mrb[30].mxu1 }
 0x43f   :  { %6956 = vpow2.f32 %v3213_v52  ;;  %v3172_v3 = vmul.f32 0.5, %v1823_v1  ;;  %v1749_v4 = vpop.f32.mrb[18].mxu0  ;;  %v6535_v5 = vpop.f32.mrb[31].mxu1 }
 0x440   :  { %6958 = vpow2.f32 %v3211_v55  ;;  %v3171_v8 = vmul.f32 0.5, %v1749_v4  ;;  %v6530_v9 = vpop.f32.mrb[19].mxu0 }
 0x441   :  { %v7834_v11 = vpop.eup %6948  ;;  %v3217_v15 = vmul.f32 1.442695, %v3172_v3 }
 0x442   :  { %v7836_v19 = vpop.eup %6950  ;;  %v3215_v22 = vmul.f32 1.442695, %v3171_v8  ;;  %v1971_v23 = vpop.f32.mrb[32].mxu1  ;;  %v3276_v25 = vsel %vm346_vm2, %v7834_v11, 0.0 }
 0x443   :  { %6960 = vpow2.f32 %v3217_v15  ;;  %v3174_v27 = vmul.f32 0.5, %v1971_v23  ;;  %v6545_v30 = vpop.f32.mrb[33].mxu1  ;;  %3277 = vadd.xlane.f32.xlu0 %v3276_v25  ;;  %v3273_v31 = vsel %vm346_vm2, %v7836_v19, 0.0  ;;  %v7862_v25 = vpop.permute.xlu1 %3871 }
 0x444   :  { %6962 = vpow2.f32 %v3215_v22  ;;  %v1897_v33 = vpop.f32.mrb[20].mxu0  ;;  %3274 = vadd.xlane.f32.xlu1 %v3273_v31 }
 0x445   :  { %v7842_v34 = vpop.eup %6952  ;;  %v3221_v26 = vmul.f32 1.442695, %v3174_v27  ;;  %v3173_v36 = vmul.f32 0.5, %v1897_v33  ;;  %v6540_v37 = vpop.f32.mrb[21].mxu0 }
 0x446   :  { %v7846_v38 = vpop.eup %6954  ;;  %v2119_v40 = vpop.f32.mrb[34].mxu1  ;;  %v3282_v42 = vsel %vm346_vm2, %v7842_v34, 0.0 }
 0x447   :  { %6964 = vpow2.f32 %v3221_v26  ;;  %v3219_v43 = vmul.f32 1.442695, %v3173_v36  ;;  %v3176_v44 = vmul.f32 0.5, %v2119_v40  ;;  %v6555_v45 = vpop.f32.mrb[35].mxu1  ;;  %3283 = vadd.xlane.f32.xlu0 %v3282_v42  ;;  %v3279_v47 = vsel %vm346_vm2, %v7846_v38, 0.0 }
 0x448   :  { %v2045_v49 = vpop.f32.mrb[22].mxu0  ;;  %3280 = vadd.xlane.f32.xlu1 %v3279_v47 }
 0x449   :  { %v7854_v51 = vpop.eup %6956  ;;  %6966 = vpow2.f32 %v3219_v43  ;;  %v3257_v52 = vpop.xlane.xlu0 %3256  ;;  %v3225_v55 = vmul.f32 1.442695, %v3176_v44  ;;  %v3175_v1 = vmul.f32 0.5, %v2045_v49 }
 0x44a   :  { %v6550_v3 = vpop.f32.mrb[23].mxu0  ;;  %v7856_v4 = vpop.eup %6958  ;;  %6968 = vrcp.f32 %v3257_v52  ;;  %v3288_v8 = vsel %vm346_vm2, %v7854_v51, 0.0 }
 0x44b   :  { %v2267_v5 = vpop.f32.mrb[36].mxu1  ;;  %6970 = vpow2.f32 %v3225_v55  ;;  %v3223_v9 = vmul.f32 1.442695, %v3175_v1  ;;  %3289 = vadd.xlane.f32.xlu0 %v3288_v8  ;;  %v3285_v23 = vsel %vm346_vm2, %v7856_v4, 0.0 }
 0x44c   :  { %v3178_v15 = vmul.f32 0.5, %v2267_v5  ;;  %v6565_v22 = vpop.f32.mrb[37].mxu1  ;;  %v2193_v27 = vpop.f32.mrb[24].mxu0  ;;  %3286 = vadd.xlane.f32.xlu1 %v3285_v23 }
 0x44d   :  { %v7864_v30 = vpop.eup %6960  ;;  %6972 = vpow2.f32 %v3223_v9  ;;  %v3263_v31 = vpop.xlane.xlu0 %3262  ;;  %v3177_v26 = vmul.f32 0.5, %v2193_v27 }
 0x44e   :  { %v3229_v33 = vmul.f32 1.442695, %v3178_v15  ;;  %v6560_v36 = vpop.f32.mrb[25].mxu0  ;;  %v7866_v37 = vpop.eup %6962  ;;  %6974 = vrcp.f32 %v3263_v31  ;;  %v3294_v40 = vsel %vm346_vm2, %v7864_v30, 0.0 }
 0x44f   :  { %v3227_v42 = vmul.f32 1.442695, %v3177_v26  ;;  %v2415_v43 = vpop.f32.mrb[38].mxu1  ;;  %3295 = vadd.xlane.f32.xlu0 %v3294_v40  ;;  %v3291_v44 = vsel %vm346_vm2, %v7866_v37, 0.0  ;;  %v7878_v9 = vpop.permute.xlu1 %4175 }
 0x450   :  { %6976 = vpow2.f32 %v3229_v33  ;;  %v3180_v45 = vmul.f32 0.5, %v2415_v43  ;;  %v6575_v47 = vpop.f32.mrb[39].mxu1  ;;  %v2341_v49 = vpop.f32.mrb[26].mxu0  ;;  %3292 = vadd.xlane.f32.xlu1 %v3291_v44 }
 0x451   :  { %v7872_v52 = vpop.eup %6964  ;;  %6978 = vpow2.f32 %v3227_v42  ;;  %v3179_v55 = vmul.f32 0.5, %v2341_v49  ;;  %v6570_v1 = vpop.f32.mrb[27].mxu0 }
 0x452   :  { %v3233_v3 = vmul.f32 1.442695, %v3180_v45  ;;  %v3300_v5 = vsel %vm346_vm2, %v7872_v52, 0.0 }
 0x453   :  { %v7876_v8 = vpop.eup %6966  ;;  %v3231_v15 = vmul.f32 1.442695, %v3179_v55  ;;  %v2563_v22 = vpop.f32.mrb[40].mxu1  ;;  %3301 = vadd.xlane.f32.xlu0 %v3300_v5 }
 0x454   :  { %v6969_v23 = vpop.eup %6968  ;;  %6980 = vpow2.f32 %v3233_v3  ;;  %v3182_v27 = vmul.f32 0.5, %v2563_v22  ;;  %v6585_v31 = vpop.f32.mrb[41].mxu1  ;;  %v3297_v26 = vsel %vm346_vm2, %v7876_v8, 0.0 }
 0x455   :  { %v2489_v33 = vpop.f32.mrb[28].mxu0  ;;  %v7882_v36 = vpop.eup %6970  ;;  %v3383_v40 = vmul.f32 %v6969_v23, %v7766_v46  ;;  %6982 = vpow2.f32 %v3231_v15  ;;  %3298 = vadd.xlane.f32.xlu1 %v3297_v26 }
 0x456   :  { %v3181_v42 = vmul.f32 0.5, %v2489_v33  ;;  %v6580_v43 = vpop.f32.mrb[29].mxu0  ;;  %v3237_v44 = vmul.f32 1.442695, %v3182_v27  ;;  %v3306_v45 = vsel %vm346_vm2, %v7882_v36, 0.0  ;;  %v7899_v27 = vpop.permute.xlu1 %4479 }
 0x457   :  { %v7887_v47 = vpop.eup %6972  ;;  %6629 = vmatmul.mubr.msk.f32.vlgmr.msra.gmra.mrb[38].mxu0 %vm346_vm2, %v3383_v40  ;;  %v2711_v55 = vpop.f32.mrb[42].mxu1  ;;  %3307 = vadd.xlane.f32.xlu0 %v3306_v45 }
 0x458   :  { %v3235_v49 = vmul.f32 1.442695, %v3181_v42  ;;  %v6975_v1 = vpop.eup %6974  ;;  %6984 = vpow2.f32 %v3237_v44  ;;  %6637 = vmatpush3.msra.mxu0 %v7788_v59  ;;  %v3184_v46 = vmul.f32 0.5, %v2711_v55  ;;  %6638 = vmatprep.mubr.msk.f32.mxu0 %vm7118_vm4, %v8226_v20  ;;  %v6595_v3 = vpop.f32.mrb[43].mxu1  ;;  %v3303_v5 = vsel %vm346_vm2, %v7887_v47, 0.0 }
 0x459   :  { %v3385_v22 = vmul.f32 %v6975_v1, %v7770_v48  ;;  %6646 = vmatprep.subr.mxu0 %v8226_v20  ;;  %v2637_v23 = vpop.f32.mrb[30].mxu0  ;;  %3304 = vadd.xlane.f32.xlu1 %v3303_v5 }
 0x45a   :  { %v7895_v15 = vpop.eup %6976  ;;  %6986 = vpow2.f32 %v3235_v49  ;;  %v3241_v59 = vmul.f32 1.442695, %v3184_v46  ;;  %v3183_v31 = vmul.f32 0.5, %v2637_v23  ;;  %v6590_v33 = vpop.f32.mrb[31].mxu0 }
 0x45b   :  { %v3312_v26 = vsel %vm346_vm2, %v7895_v15, 0.0  ;;  %v7903_v40 = vpop.eup %6978  ;;  %6639 = vmatmul.mubr.msk.f32.vlgmr.msra.gmra.mrb[40].mxu0 %vm346_vm2, %v3385_v22  ;;  %v7918_v22 = vpop.permute.xlu1 %4783 }
 0x45c   :  { %3313 = vadd.xlane.f32.xlu0 %v3312_v26  ;;  %6988 = vpow2.f32 %v3241_v59  ;;  %v3239_v48 = vmul.f32 1.442695, %v3183_v31  ;;  %6647 = vmatpush3.msra.mxu0 %v7804_v10  ;;  %v2859_v42 = vpop.f32.mrb[44].mxu1  ;;  %v3309_v43 = vsel %vm346_vm2, %v7903_v40, 0.0 }
 0x45d   :  { %6648 = vmatprep.mubr.msk.f32.mxu0 %vm7118_vm4, %v8226_v20  ;;  %v3186_v44 = vmul.f32 0.5, %v2859_v42  ;;  %v6605_v45 = vpop.f32.mrb[45].mxu1  ;;  %3310 = vadd.xlane.f32.xlu1 %v3309_v43  ;;  %v3266_v43 = vpop.xlane.xlu0 %3265 }
 0x45e   :  { %6656 = vmatprep.subr.mxu0 %v8226_v20  ;;  %v7912_v49 = vpop.eup %6980  ;;  %6990 = vpow2.f32 %v3239_v48  ;;  %v2785_v55 = vpop.f32.mrb[32].mxu0 }
 0x45f   :  { %v7914_v1 = vpop.eup %6982  ;;  %v3245_v46 = vmul.f32 1.442695, %v3186_v44  ;;  %v3185_v10 = vmul.f32 0.5, %v2785_v55  ;;  %v6600_v3 = vpop.f32.mrb[33].mxu0  ;;  %v3318_v5 = vsel %vm346_vm2, %v7912_v49, 0.0 }
 0x460   :  { %3319 = vadd.xlane.f32.xlu0 %v3318_v5  ;;  %v3315_v23 = vsel %vm346_vm2, %v7914_v1, 0.0 }
 0x461   :  { %6992 = vpow2.f32 %v3245_v46  ;;  %v3243_v59 = vmul.f32 1.442695, %v3185_v10  ;;  %v3007_v31 = vpop.f32.mrb[46].mxu1  ;;  %3316 = vadd.xlane.f32.xlu1 %v3315_v23 }
 0x462   :  { %v7922_v33 = vpop.eup %6984  ;;  %v3188_v26 = vmul.f32 0.5, %v3007_v31  ;;  %v6615_v48 = vpop.f32.mrb[47].mxu1 }
 0x463   :  { %6994 = vpow2.f32 %v3243_v59  ;;  %v2933_v44 = vpop.f32.mrb[34].mxu0  ;;  %v3324_v45 = vsel %vm346_vm2, %v7922_v33, 0.0 }
 0x464   :  { %v7924_v42 = vpop.eup %6986  ;;  %v3249_v55 = vmul.f32 1.442695, %v3188_v26  ;;  %v3187_v3 = vmul.f32 0.5, %v2933_v44  ;;  %v6610_v5 = vpop.f32.mrb[35].mxu0  ;;  %3325 = vadd.xlane.f32.xlu0 %v3324_v45 }
 0x465   :  { %v3260_v20 = vpop.xlane.xlu1 %3259  ;;  %v3321_v46 = vsel %vm346_vm2, %v7924_v42, 0.0 }
 0x466   :  { %6996 = vrcp.f32 %v3260_v20  ;;  %3322 = vadd.xlane.f32.xlu1 %v3321_v46  ;;  %v7930_v10 = vpop.eup %6988  ;;  %v3247_v23 = vmul.f32 1.442695, %v3187_v3  ;;  %v3155_v31 = vpop.f32.mrb[48].mxu1 }
 0x467   :  { %6998 = vpow2.f32 %v3249_v55  ;;  %v3190_v59 = vmul.f32 0.5, %v3155_v31  ;;  %v6625_v48 = vpop.f32.mrb[49].mxu1  ;;  %v3081_v7 = vpop.f32.mrb[36].mxu0  ;;  %v3330_v26 = vsel %vm346_vm2, %v7930_v10, 0.0 }
 0x468   :  { %7000 = vrcp.f32 %v3266_v43  ;;  %v7934_v44 = vpop.eup %6990  ;;  %v3189_v45 = vmul.f32 0.5, %v3081_v7  ;;  %v6620_v5 = vpop.f32.mrb[37].mxu0  ;;  %3331 = vadd.xlane.f32.xlu0 %v3330_v26 }
 0x469   :  { %7002 = vpow2.f32 %v3247_v23  ;;  %v3253_v20 = vmul.f32 1.442695, %v3190_v59  ;;  %v3327_v46 = vsel %vm346_vm2, %v7934_v44, 0.0 }
 0x46a   :  { %v3251_v55 = vmul.f32 1.442695, %v3189_v45  ;;  %3328 = vadd.xlane.f32.xlu1 %v3327_v46  ;;  %v8229_v46 = vmov 0.0  }
 0x46b   :  { %v7938_v3 = vpop.eup %6992  ;;  %7004 = vpow2.f32 %v3253_v20 }
 0x46c   :  { %7006 = vpow2.f32 %v3251_v55  ;;  %v3336_v43 = vsel %vm346_vm2, %v7938_v3, 0.0 }
 0x46d   :  { %v7942_v31 = vpop.eup %6994  ;;  %3337 = vadd.xlane.f32.xlu0 %v3336_v43 }
 0x46e   :  { %v3333_v7 = vsel %vm346_vm2, %v7942_v31, 0.0 }
 0x46f   :  { %3334 = vadd.xlane.f32.xlu1 %v3333_v7 }
 0x470   :  { %v6997_v23 = vpop.eup %6996 }
 0x471   :  { %v7946_v59 = vpop.eup %6998  ;;  %v3384_v48 = vmul.f32 %v6997_v23, %v7778_v54 }
 0x472   :  { %v7001_v26 = vpop.eup %7000  ;;  %v3342_v45 = vsel %vm346_vm2, %v7946_v59, 0.0 }
 0x473   :  { %v7951_v5 = vpop.eup %7002  ;;  %6634 = vmatmul.mubr.msk.f32.vlgmr.msra.gmra.mrb[50].mxu1 %vm346_vm2, %v3384_v48  ;;  %3343 = vadd.xlane.f32.xlu0 %v3342_v45  ;;  %v3386_v55 = vmul.f32 %v7001_v26, %v7774_v50 }
 0x474   :  { %6642 = vmatpush3.msra.mxu1 %v7782_v56  ;;  %v3339_v20 = vsel %vm346_vm2, %v7951_v5, 0.0  ;;  %6643 = vmatprep.mubr.msk.f32.mxu1 %vm7118_vm4, %v8229_v46 }
 0x475   :  { %3340 = vadd.xlane.f32.xlu1 %v3339_v20  ;;  %6651 = vmatprep.subr.mxu1 %v8229_v46  ;;  %v7961_v54 = vpop.eup %7004 }
 0x476   :  { %v7963_v43 = vpop.eup %7006  ;;  %v3348_v56 = vsel %vm346_vm2, %v7961_v54, 0.0 }
 0x477   :  { %6644 = vmatmul.mubr.msk.f32.vlgmr.msra.gmra.mrb[52].mxu1 %vm346_vm2, %v3386_v55  ;;  %3349 = vadd.xlane.f32.xlu0 %v3348_v56  ;;  %v3345_v7 = vsel %vm346_vm2, %v7963_v43, 0.0 }
 0x478   :  { %6652 = vmatpush3.msra.mxu1 %v7784_v57  ;;  %6653 = vmatprep.mubr.msk.f32.mxu1 %vm7118_vm4, %v8229_v46 }
 0x479   :  { %3346 = vadd.xlane.f32.xlu1 %v3345_v7  ;;  %6661 = vmatprep.subr.mxu1 %v8229_v46 }
 0x48a   :  { %5771 = vrot.lane.b32.xlu1 %v7706_v28, %s7126_s26 }
 0x48d   :  { %5695 = vrot.lane.b32.xlu0 %v7711_v24, %s7126_s26 }
 0x4b9   :  { %v3272_v50 = vpop.xlane.xlu0 %3271 }
 0x4ba   :  { %7008 = vrcp.f32 %v3272_v50 }
 0x4bd   :  { %v3269_v23 = vpop.xlane.xlu1 %3268 }
 0x4be   :  { %7010 = vrcp.f32 %v3269_v23 }
 0x4c4   :  { %v7009_v57 = vpop.eup %7008 }
 0x4c5   :  { %v3388_v48 = vmul.f32 %v7009_v57, %v7810_v14 }
 0x4c7   :  { %6654 = vmatmul.mubr.msk.f32.vlgmr.msra.gmra.mrb[54].mxu1 %vm346_vm2, %v3388_v48 }
 0x4c8   :  { %v7011_v26 = vpop.eup %7010  ;;  %6662 = vmatpush3.msra.mxu1 %v7806_v12  ;;  %6663 = vmatprep.mubr.msk.f32.mxu1 %vm7118_vm4, %v8229_v46 }
 0x4c9   :  { %v3387_v28 = vmul.f32 %v7011_v26, %v7816_v17  ;;  %6671 = vmatprep.subr.mxu1 %v8229_v46 }
 0x4cb   :  { %6649 = vmatmul.mubr.msk.f32.vlgmr.msra.gmra.mrb[42].mxu0 %vm346_vm2, %v3387_v28 }
 0x4cc   :  { %6657 = vmatpush3.msra.mxu0 %v7862_v25  ;;  %6658 = vmatprep.mubr.msk.f32.mxu0 %vm7118_vm4, %v8229_v46 }
 0x4cd   :  { %6666 = vmatprep.subr.mxu0 %v8229_v46 }
 0x4d0   :  { %v3278_v24 = vpop.xlane.xlu0 %3277 }
 0x4d1   :  { %7012 = vrcp.f32 %v3278_v24  ;;  %v3275_v14 = vpop.xlane.xlu1 %3274 }
 0x4d2   :  { %7014 = vrcp.f32 %v3275_v14 }
 0x4d4   :  { %v3284_v12 = vpop.xlane.xlu0 %3283 }
 0x4d5   :  { %7016 = vrcp.f32 %v3284_v12  ;;  %v3281_v45 = vpop.xlane.xlu1 %3280 }
 0x4d6   :  { %7018 = vrcp.f32 %v3281_v45 }
 0x4d8   :  { %v3290_v17 = vpop.xlane.xlu0 %3289 }
 0x4d9   :  { %7020 = vrcp.f32 %v3290_v17  ;;  %v3287_v20 = vpop.xlane.xlu1 %3286 }
 0x4da   :  { %7022 = vrcp.f32 %v3287_v20 }
 0x4db   :  { %v7013_v55 = vpop.eup %7012 }
 0x4dc   :  { %v7015_v56 = vpop.eup %7014  ;;  %v3390_v25 = vmul.f32 %v7013_v55, %v7834_v11  ;;  %v3296_v7 = vpop.xlane.xlu0 %3295 }
 0x4dd   :  { %v3389_v50 = vmul.f32 %v7015_v56, %v7836_v19  ;;  %7024 = vrcp.f32 %v3296_v7  ;;  %v3293_v23 = vpop.xlane.xlu1 %3292 }
 0x4de   :  { %7026 = vrcp.f32 %v3293_v23  ;;  %6664 = vmatmul.mubr.msk.f32.vlgmr.msra.gmra.mrb[56].mxu1 %vm346_vm2, %v3390_v25 }
 0x4df   :  { %v7017_v57 = vpop.eup %7016  ;;  %6672 = vmatpush3.msra.mxu1 %v7786_v58  ;;  %6659 = vmatmul.mubr.msk.f32.vlgmr.msra.gmra.mrb[44].mxu0 %vm346_vm2, %v3389_v50 }
 0x4e0   :  { %v7019_v48 = vpop.eup %7018  ;;  %v3392_v26 = vmul.f32 %v7017_v57, %v7842_v34  ;;  %6667 = vmatpush3.msra.mxu0 %v7808_v13  ;;  %v3302_v28 = vpop.xlane.xlu0 %3301  ;;  %6673 = vmatprep.mubr.msk.f32.mxu1 %vm7118_vm4, %v8229_v46 }
 0x4e1   :  { %v3391_v11 = vmul.f32 %v7019_v48, %v7846_v38  ;;  %7028 = vrcp.f32 %v3302_v28  ;;  %6681 = vmatprep.subr.mxu1 %v8229_v46  ;;  %6668 = vmatprep.mubr.msk.f32.mxu0 %vm7118_vm4, %v8229_v46 }
 0x4e2   :  { %v3299_v58 = vpop.xlane.xlu1 %3298  ;;  %6674 = vmatmul.mubr.msk.f32.vlgmr.msra.gmra.mrb[58].mxu1 %vm346_vm2, %v3392_v26  ;;  %6676 = vmatprep.subr.mxu0 %v8229_v46 }
 0x4e3   :  { %v7021_v19 = vpop.eup %7020  ;;  %7030 = vrcp.f32 %v3299_v58  ;;  %6682 = vmatpush3.msra.mxu1 %v7814_v16  ;;  %6669 = vmatmul.mubr.msk.f32.vlgmr.msra.gmra.mrb[46].mxu0 %vm346_vm2, %v3391_v11 }
 0x4e4   :  { %v7023_v13 = vpop.eup %7022  ;;  %v3394_v34 = vmul.f32 %v7021_v19, %v7854_v51  ;;  %6677 = vmatpush3.msra.mxu0 %v7878_v9  ;;  %v3308_v38 = vpop.xlane.xlu0 %3307  ;;  %6683 = vmatprep.mubr.msk.f32.mxu1 %vm7118_vm4, %v8229_v46 }
 0x4e5   :  { %v3393_v24 = vmul.f32 %v7023_v13, %v7856_v4  ;;  %7032 = vrcp.f32 %v3308_v38  ;;  %6691 = vmatprep.subr.mxu1 %v8229_v46  ;;  %6678 = vmatprep.mubr.msk.f32.mxu0 %vm7118_vm4, %v8229_v46 }
 0x4e6   :  { %v3305_v16 = vpop.xlane.xlu1 %3304  ;;  %6684 = vmatmul.mubr.msk.f32.vlgmr.msra.gmra.mrb[60].mxu1 %vm346_vm2, %v3394_v34  ;;  %6686 = vmatprep.subr.mxu0 %v8229_v46 }
 0x4e7   :  { %v7025_v51 = vpop.eup %7024  ;;  %7034 = vrcp.f32 %v3305_v16  ;;  %6692 = vmatpush3.msra.mxu1 %v7790_v60  ;;  %6679 = vmatmul.mubr.msk.f32.vlgmr.msra.gmra.mrb[48].mxu0 %vm346_vm2, %v3393_v24 }
 0x4e8   :  { %v7027_v9 = vpop.eup %7026  ;;  %v3396_v4 = vmul.f32 %v7025_v51, %v7864_v30  ;;  %6687 = vmatpush3.msra.mxu0 %v7818_v18  ;;  %6693 = vmatprep.mubr.msk.f32.mxu1 %vm7118_vm4, %v8229_v46 }
 0x4e9   :  { %v3314_v14 = vpop.xlane.xlu0 %3313  ;;  %v3395_v12 = vmul.f32 %v7027_v9, %v7866_v37  ;;  %6701 = vmatprep.subr.mxu1 %v8229_v46  ;;  %6688 = vmatprep.mubr.msk.f32.mxu0 %vm7118_vm4, %v8229_v46 }
 0x4ea   :  { %7036 = vrcp.f32 %v3314_v14  ;;  %v3311_v60 = vpop.xlane.xlu1 %3310  ;;  %6694 = vmatmul.mubr.msk.f32.vlgmr.msra.gmra.mrb[62].mxu1 %vm346_vm2, %v3396_v4  ;;  %6696 = vmatprep.subr.mxu0 %v8229_v46 }
 0x4eb   :  { %v7029_v30 = vpop.eup %7028  ;;  %7038 = vrcp.f32 %v3311_v60  ;;  %6702 = vmatpush3.msra.mxu1 %v7822_v21  ;;  %6689 = vmatmul.mubr.msk.f32.vlgmr.msra.gmra.mrb[50].mxu0 %vm346_vm2, %v3395_v12 }
 0x4ec   :  { %v3398_v18 = vmul.f32 %v7029_v30, %v7872_v52  ;;  %6697 = vmatpush3.msra.mxu0 %v7899_v27  ;;  %6703 = vmatprep.mubr.msk.f32.mxu1 %vm7118_vm4, %v8229_v46 }
 0x4ed   :  { %v7031_v37 = vpop.eup %7030  ;;  %v3320_v45 = vpop.xlane.xlu0 %3319  ;;  %6711 = vmatprep.subr.mxu1 %v8229_v46  ;;  %6698 = vmatprep.mubr.msk.f32.mxu0 %vm7118_vm4, %v8229_v46 }
 0x4ee   :  { %v3397_v17 = vmul.f32 %v7031_v37, %v7876_v8  ;;  %7040 = vrcp.f32 %v3320_v45  ;;  %v3317_v21 = vpop.xlane.xlu1 %3316  ;;  %6704 = vmatmul.mubr.msk.f32.vlgmr.msra.gmra.mrb[64].mxu1 %vm346_vm2, %v3398_v18  ;;  %6706 = vmatprep.subr.mxu0 %v8229_v46 }
 0x4ef   :  { %v7033_v52 = vpop.eup %7032  ;;  %7042 = vrcp.f32 %v3317_v21  ;;  %6712 = vmatpush3.msra.mxu1 %v7794_v62  ;;  %6713 = vmatprep.mubr.msk.f32.mxu1 %vm7118_vm4, %v8229_v46 }
 0x4f0   :  { %v3400_v27 = vmul.f32 %v7033_v52, %v7882_v36  ;;  %6699 = vmatmul.mubr.msk.f32.vlgmr.msra.gmra.mrb[52].mxu0 %vm346_vm2, %v3397_v17  ;;  %6721 = vmatprep.subr.mxu1 %v8229_v46 }
 0x4f1   :  { %v7035_v8 = vpop.eup %7034  ;;  %6707 = vmatpush3.msra.mxu0 %v7824_v29  ;;  %v3326_v20 = vpop.xlane.xlu0 %3325  ;;  %6708 = vmatprep.mubr.msk.f32.mxu0 %vm7118_vm4, %v8229_v46 }
 0x4f2   :  { %v3399_v55 = vmul.f32 %v7035_v8, %v7887_v47  ;;  %7044 = vrcp.f32 %v3326_v20  ;;  %6714 = vmatmul.mubr.msk.f32.vlgmr.msra.gmra.mrb[66].mxu1 %vm346_vm2, %v3400_v27  ;;  %6716 = vmatprep.subr.mxu0 %v8229_v46 }
 0x4f3   :  { %v3323_v62 = vpop.xlane.xlu1 %3322  ;;  %6722 = vmatpush3.msra.mxu1 %v7826_v32  ;;  %6723 = vmatprep.mubr.msk.f32.mxu1 %vm7118_vm4, %v8229_v46 }
 0x4f4   :  { %v7037_v36 = vpop.eup %7036  ;;  %7046 = vrcp.f32 %v3323_v62  ;;  %6709 = vmatmul.mubr.msk.f32.vlgmr.msra.gmra.mrb[54].mxu0 %vm346_vm2, %v3399_v55  ;;  %6731 = vmatprep.subr.mxu1 %v8229_v46 }
 0x4f5   :  { %v3402_v29 = vmul.f32 %v7037_v36, %v7895_v15  ;;  %v7039_v47 = vpop.eup %7038  ;;  %6717 = vmatpush3.msra.mxu0 %v7918_v22  ;;  %v3332_v56 = vpop.xlane.xlu0 %3331  ;;  %6718 = vmatprep.mubr.msk.f32.mxu0 %vm7118_vm4, %v8229_v46 }
 0x4f6   :  { %v3401_v25 = vmul.f32 %v7039_v47, %v7903_v40  ;;  %7048 = vrcp.f32 %v3332_v56  ;;  %6726 = vmatprep.subr.mxu0 %v8229_v46 }
 0x4f7   :  { %6724 = vmatmul.mubr.msk.f32.vlgmr.msra.gmra.mrb[68].mxu1 %vm346_vm2, %v3402_v29  ;;  %v3329_v32 = vpop.xlane.xlu1 %3328 }
 0x4f8   :  { %6732 = vmatpush3.msra.mxu1 %v7792_v61  ;;  %6733 = vmatprep.mubr.msk.f32.mxu1 %vm7118_vm4, %v8229_v46  ;;  %v7041_v15 = vpop.eup %7040  ;;  %7050 = vrcp.f32 %v3329_v32 }
 0x4f9   :  { %6719 = vmatmul.mubr.msk.f32.vlgmr.msra.gmra.mrb[56].mxu0 %vm346_vm2, %v3401_v25  ;;  %6741 = vmatprep.subr.mxu1 %v8229_v46  ;;  %v7043_v22 = vpop.eup %7042  ;;  %v3404_v40 = vmul.f32 %v7041_v15, %v7912_v49 }
 0x4fa   :  { %6727 = vmatpush3.msra.mxu0 %v7828_v41  ;;  %6728 = vmatprep.mubr.msk.f32.mxu0 %vm7118_vm4, %v8229_v46  ;;  %v3403_v7 = vmul.f32 %v7043_v22, %v7914_v1  ;;  %v3338_v61 = vpop.xlane.xlu0 %3337 }
 0x4fb   :  { %6736 = vmatprep.subr.mxu0 %v8229_v46  ;;  %7052 = vrcp.f32 %v3338_v61  ;;  %6734 = vmatmul.mubr.msk.f32.vlgmr.msra.gmra.mrb[70].mxu1 %vm346_vm2, %v3404_v40 }
 0x4fc   :  { %v7045_v50 = vpop.eup %7044  ;;  %v3335_v23 = vpop.xlane.xlu1 %3334  ;;  %6742 = vmatpush3.msra.mxu1 %v7832_v6  ;;  %6743 = vmatprep.mubr.msk.f32.mxu1 %vm7118_vm4, %v8229_v46 }
 0x4fd   :  { %6729 = vmatmul.mubr.msk.f32.vlgmr.msra.gmra.mrb[58].mxu0 %vm346_vm2, %v3403_v7  ;;  %v3406_v41 = vmul.f32 %v7045_v50, %v7922_v33  ;;  %7054 = vrcp.f32 %v3335_v23  ;;  %6751 = vmatprep.subr.mxu1 %v8229_v46 }
 0x4fe   :  { %v7047_v49 = vpop.eup %7046  ;;  %6737 = vmatpush3.msra.mxu0 %v7830_v53  ;;  %6738 = vmatprep.mubr.msk.f32.mxu0 %vm7118_vm4, %v8229_v46 }
 0x4ff   :  { %v3405_v1 = vmul.f32 %v7047_v49, %v7924_v42  ;;  %6744 = vmatmul.mubr.msk.f32.vlgmr.msra.gmra.mrb[72].mxu1 %vm346_vm2, %v3406_v41  ;;  %6746 = vmatprep.subr.mxu0 %v8229_v46 }
 0x500   :  { %v3344_v57 = vpop.xlane.xlu0 %3343  ;;  %v7049_v6 = vpop.eup %7048  ;;  %6752 = vmatpush3.msra.mxu1 %v7796_v63  ;;  %6753 = vmatprep.mubr.msk.f32.mxu1 %vm7118_vm4, %v8229_v46 }
 0x501   :  { %7056 = vrcp.f32 %v3344_v57  ;;  %6739 = vmatmul.mubr.msk.f32.vlgmr.msra.gmra.mrb[60].mxu0 %vm346_vm2, %v3405_v1  ;;  %v3408_v53 = vmul.f32 %v7049_v6, %v7930_v10  ;;  %6761 = vmatprep.subr.mxu1 %v8229_v46 }
 0x502   :  { %v3341_v33 = vpop.xlane.xlu1 %3340  ;;  %6747 = vmatpush3.msra.mxu0 %v7798_v0  ;;  %v7051_v42 = vpop.eup %7050  ;;  %6748 = vmatprep.mubr.msk.f32.mxu0 %vm7118_vm4, %v8229_v46 }
 0x503   :  { %7058 = vrcp.f32 %v3341_v33  ;;  %v3407_v48 = vmul.f32 %v7051_v42, %v7934_v44  ;;  %6754 = vmatmul.mubr.msk.f32.vlgmr.msra.gmra.mrb[74].mxu1 %vm346_vm2, %v3408_v53  ;;  %6756 = vmatprep.subr.mxu0 %v8229_v46 }
 0x504   :  { %v3350_v63 = vpop.xlane.xlu0 %3349  ;;  %6762 = vmatpush3.msra.mxu1 %v7848_v39  ;;  %6763 = vmatprep.mubr.msk.f32.mxu1 %vm7118_vm4, %v8229_v46 }
 0x505   :  { %v7053_v0 = vpop.eup %7052  ;;  %7060 = vrcp.f32 %v3350_v63  ;;  %6749 = vmatmul.mubr.msk.f32.vlgmr.msra.gmra.mrb[62].mxu0 %vm346_vm2, %v3407_v48  ;;  %6771 = vmatprep.subr.mxu1 %v8229_v46 }
 0x506   :  { %v3347_v10 = vpop.xlane.xlu1 %3346  ;;  %v3410_v26 = vmul.f32 %v7053_v0, %v7938_v3  ;;  %6757 = vmatpush3.msra.mxu0 %v7844_v35  ;;  %6758 = vmatprep.mubr.msk.f32.mxu0 %vm7118_vm4, %v8229_v46  ;;  %v8230_v3 = vld [vmem:[#allocation8_spill] sm:$0xff] }
 0x507   :  { %7062 = vrcp.f32 %v3347_v10  ;;  %v7055_v44 = vpop.eup %7054  ;;  %6766 = vmatprep.subr.mxu0 %v8229_v46 }
 0x508   :  { %v3409_v39 = vmul.f32 %v7055_v44, %v7942_v31  ;;  %6764 = vmatmul.mubr.msk.f32.vlgmr.msra.gmra.mrb[76].mxu1 %vm346_vm2, %v3410_v26  ;;  %v5696_v19 = vpop.permute.xlu0 %5695 }
 0x509   :  { %6772 = vmatpush3.msra.mxu1 %v7800_v2  ;;  %6773 = vmatprep.mubr.msk.f32.mxu1 %vm7118_vm4, %v8229_v46 }
 0x50a   :  { %6759 = vmatmul.mubr.msk.f32.vlgmr.msra.gmra.mrb[64].mxu0 %vm346_vm2, %v3409_v39  ;;  %6781 = vmatprep.subr.mxu1 %v8229_v46  ;;  %v5772_v11 = vpop.permute.xlu1 %5771 }
 0x50b   :  { %v7057_v28 = vpop.eup %7056  ;;  %6767 = vmatpush3.msra.mxu0 %v8230_v3  ;;  %6768 = vmatprep.mubr.msk.f32.mxu0 %vm7118_vm4, %v8229_v46 }
 0x50c   :  { %v3412_v35 = vmul.f32 %v7057_v28, %v7946_v59  ;;  %6776 = vmatprep.subr.mxu0 %v8229_v46 }
 0x50d   :  { %v7059_v31 = vpop.eup %7058 }
 0x50e   :  { %v3411_v2 = vmul.f32 %v7059_v31, %v7951_v5  ;;  %6774 = vmatmul.mubr.msk.f32.vlgmr.msra.gmra.mrb[78].mxu1 %vm346_vm2, %v3412_v35 }
 0x50f   :  { %6782 = vmatpush3.msra.mxu1 %v5772_v11  ;;  %6783 = vmatprep.mubr.msk.f32.mxu1 %vm7118_vm4, %v8229_v46  ;;  %v7061_v58 = vpop.eup %7060 }
 0x510   :  { %6769 = vmatmul.mubr.msk.f32.vlgmr.msra.gmra.mrb[66].mxu0 %vm346_vm2, %v3411_v2  ;;  %v3414_v13 = vmul.f32 %v7061_v58, %v7961_v54 }
 0x511   :  { %v7063_v59 = vpop.eup %7062  ;;  %6777 = vmatpush3.msra.mxu0 %v5696_v19  ;;  %6778 = vmatprep.mubr.msk.f32.mxu0 %vm7118_vm4, %v8229_v46 }
 0x512   :  { %v3413_v5 = vmul.f32 %v7063_v59, %v7963_v43  ;;  %6784 = vmatmul.mubr.msk.f32.vlgmr.msra.gmra.mrb[80].mxu1 %vm346_vm2, %v3414_v13 }
 0x514   :  { %6779 = vmatmul.mubr.msk.f32.vlgmr.msra.gmra.mrb[68].mxu0 %vm346_vm2, %v3413_v5  ;;  %v6918_v5 = vld [vmem:[%s8219_s6] sm:$0xff]  }
 0x515   :  { %6786 = vmatprep.subr.bf16.mxu0 %v6918_v5 }
 0x516   :  { %6787 = vmatpush3.bf16.msra.mxu0 %v6918_v5 }
 0x52a   :  { %v8134_v34 = vpop.f32.mrb[38].mxu0 }
 0x52b   :  { %v6630_v38 = vpop.f32.mrb[39].mxu0 }
 0x52e   :  { %v8136_v24 = vpop.f32.mrb[40].mxu0 }
 0x52f   :  { %v6640_v16 = vpop.f32.mrb[41].mxu0 }
 0x546   :  { %v8138_v51 = vpop.f32.mrb[50].mxu1 }
 0x547   :  { %v6635_v9 = vpop.f32.mrb[51].mxu1 }
 0x54a   :  { %v8140_v54 = vpop.f32.mrb[52].mxu1 }
 0x54b   :  { %v6645_v4 = vpop.f32.mrb[53].mxu1 }
 0x54c   :  { %v6919_v4 = vld [vmem:[%s8219_s6 + $0x8] sm:$0xff]  }
 0x54d   :  { %6788 = vmatprep.subr.bf16.mxu0 %v6919_v4 }
 0x54e   :  { %6789 = vmatpush3.bf16.msra.mxu0 %v6919_v4 }
 0x59a   :  { %v3867_v14 = vpop.f32.mrb[54].mxu1 }
 0x59b   :  { %v6655_v46 = vpop.f32.mrb[55].mxu1 }
 0x59e   :  { %v3791_v12 = vpop.f32.mrb[42].mxu0 }
 0x59f   :  { %v6842_v43 = vpack.i.bf16 %v3867_v14, %v3791_v12  ;;  %v6650_v60 = vpop.f32.mrb[43].mxu0 }
 0x5a1   :  { %6843 = vrot.lane.b32.xlu0 %v6842_v43, %s7127_s8 }
 0x5b1   :  { %v4019_v30 = vpop.f32.mrb[56].mxu1 }
 0x5b2   :  { %v3943_v18 = vpop.f32.mrb[44].mxu0  ;;  %v6665_v37 = vpop.f32.mrb[57].mxu1 }
 0x5b3   :  { %v6847_v45 = vpack.i.bf16 %v4019_v30, %v3943_v18  ;;  %v6660_v17 = vpop.f32.mrb[45].mxu0 }
 0x5b5   :  { %v4171_v21 = vpop.f32.mrb[58].mxu1  ;;  %6848 = vrot.lane.b32.xlu1 %v6847_v45, %s7127_s8 }
 0x5b6   :  { %v4095_v52 = vpop.f32.mrb[46].mxu0  ;;  %v6675_v27 = vpop.f32.mrb[59].mxu1 }
 0x5b7   :  { %v6852_v8 = vpack.i.bf16 %v4171_v21, %v4095_v52  ;;  %v6670_v20 = vpop.f32.mrb[47].mxu0 }
 0x5b9   :  { %v4323_v55 = vpop.f32.mrb[60].mxu1  ;;  %6853 = vrot.lane.b32.xlu0 %v6852_v8, %s7128_s2 }
 0x5ba   :  { %v4247_v62 = vpop.f32.mrb[48].mxu0  ;;  %v6685_v36 = vpop.f32.mrb[61].mxu1 }
 0x5bb   :  { %v6857_v29 = vpack.i.bf16 %v4323_v55, %v4247_v62  ;;  %v6680_v47 = vpop.f32.mrb[49].mxu0 }
 0x5bd   :  { %v4475_v56 = vpop.f32.mrb[62].mxu1  ;;  %6858 = vrot.lane.b32.xlu1 %v6857_v29, %s7128_s2 }
 0x5be   :  { %v4399_v25 = vpop.f32.mrb[50].mxu0  ;;  %v6695_v32 = vpop.f32.mrb[63].mxu1 }
 0x5bf   :  { %v6862_v15 = vpack.i.bf16 %v4475_v56, %v4399_v25  ;;  %v6690_v22 = vpop.f32.mrb[51].mxu0 }
 0x5c1   :  { %v4627_v40 = vpop.f32.mrb[64].mxu1  ;;  %6863 = vrot.lane.b32.xlu0 %v6862_v15, %s7129_s27 }
 0x5c2   :  { %v6705_v7 = vpop.f32.mrb[65].mxu1 }
 0x5c3   :  { %v4551_v61 = vpop.f32.mrb[52].mxu0 }
 0x5c4   :  { %v6867_v50 = vpack.i.bf16 %v4627_v40, %v4551_v61  ;;  %v6700_v23 = vpop.f32.mrb[53].mxu0 }
 0x5c5   :  { %v4779_v49 = vpop.f32.mrb[66].mxu1 }
 0x5c6   :  { %6868 = vrot.lane.b32.xlu1 %v6867_v50, %s7129_s27  ;;  %v6715_v41 = vpop.f32.mrb[67].mxu1 }
 0x5c7   :  { %v4703_v1 = vpop.f32.mrb[54].mxu0 }
 0x5c8   :  { %v6872_v57 = vpack.i.bf16 %v4779_v49, %v4703_v1  ;;  %v6710_v6 = vpop.f32.mrb[55].mxu0 }
 0x5ca   :  { %v4931_v53 = vpop.f32.mrb[68].mxu1  ;;  %6873 = vrot.lane.b32.xlu0 %v6872_v57, %s7130_s28 }
 0x5cb   :  { %v6725_v33 = vpop.f32.mrb[69].mxu1 }
 0x5cc   :  { %v4855_v42 = vpop.f32.mrb[56].mxu0 }
 0x5cd   :  { %v6877_v48 = vpack.i.bf16 %v4931_v53, %v4855_v42  ;;  %v6720_v63 = vpop.f32.mrb[57].mxu0 }
 0x5ce   :  { %v5083_v0 = vpop.f32.mrb[70].mxu1 }
 0x5cf   :  { %6878 = vrot.lane.b32.xlu1 %v6877_v48, %s7130_s28  ;;  %v6735_v26 = vpop.f32.mrb[71].mxu1 }
 0x5d0   :  { %v5007_v10 = vpop.f32.mrb[58].mxu0 }
 0x5d1   :  { %v6882_v44 = vpack.i.bf16 %v5083_v0, %v5007_v10  ;;  %v6730_v39 = vpop.f32.mrb[59].mxu0 }
 0x5d2   :  { %v5235_v28 = vpop.f32.mrb[72].mxu1 }
 0x5d3   :  { %6883 = vrot.lane.b32.xlu0 %v6882_v44, %s7131_s3  ;;  %v6745_v3 = vpop.f32.mrb[73].mxu1 }
 0x5d4   :  { %v5159_v35 = vpop.f32.mrb[60].mxu0 }
 0x5d5   :  { %v6887_v31 = vpack.i.bf16 %v5235_v28, %v5159_v35  ;;  %v6740_v2 = vpop.f32.mrb[61].mxu0 }
 0x5d6   :  { %v5387_v11 = vpop.f32.mrb[74].mxu1 }
 0x5d7   :  { %6888 = vrot.lane.b32.xlu1 %v6887_v31, %s7131_s3  ;;  %v6755_v58 = vpop.f32.mrb[75].mxu1 }
 0x5d8   :  { %v5311_v19 = vpop.f32.mrb[62].mxu0 }
 0x5d9   :  { %v6892_v59 = vpack.i.bf16 %v5387_v11, %v5311_v19  ;;  %v6750_v13 = vpop.f32.mrb[63].mxu0 }
 0x5db   :  { %v5539_v38 = vpop.f32.mrb[76].mxu1  ;;  %6893 = vrot.lane.b32.xlu0 %v6892_v59, %s7132_s13 }
 0x5dc   :  { %v6765_v16 = vpop.f32.mrb[77].mxu1 }
 0x5dd   :  { %v5463_v9 = vpop.f32.mrb[64].mxu0 }
 0x5de   :  { %v6897_v14 = vpack.i.bf16 %v5539_v38, %v5463_v9  ;;  %v6760_v46 = vpop.f32.mrb[65].mxu0 }
 0x5e0   :  { %6898 = vrot.lane.b32.xlu1 %v6897_v14, %s7132_s13 }
 0x5e1   :  { %v5691_v12 = vpop.f32.mrb[78].mxu1 }
 0x5e2   :  { %v6775_v43 = vpop.f32.mrb[79].mxu1 }
 0x5e3   :  { %v5615_v60 = vpop.f32.mrb[66].mxu0 }
 0x5e4   :  { %v6902_v30 = vpack.i.bf16 %v5691_v12, %v5615_v60  ;;  %v6770_v18 = vpop.f32.mrb[67].mxu0 }
 0x5e5   :  { %v5843_v37 = vpop.f32.mrb[80].mxu1 }
 0x5e6   :  { %6903 = vrot.lane.b32.xlu0 %v6902_v30, %s7133_s5  ;;  %v6785_v17 = vpop.f32.mrb[81].mxu1 }
 0x5e7   :  { %v5767_v45 = vpop.f32.mrb[68].mxu0 }
 0x5e8   :  { %v6907_v21 = vpack.i.bf16 %v5843_v37, %v5767_v45  ;;  %v6780_v52 = vpop.f32.mrb[69].mxu0 }
 0x5ea   :  { %6908 = vrot.lane.b32.xlu1 %v6907_v21, %s7133_s5 }
 0x613   :  { %v6844_v27 = vpop.permute.xlu0 %6843 }
 0x614   :  { %v6846_v47 = vunpack.i.h.bf16 %v6844_v27  ;;  %v6845_v56 = vunpack.i.l.bf16 %v6844_v27 }
 0x616   :  { %v5960_v41 = vsel %vm790_vm5, %v8138_v51, %v6846_v47  ;;  %v5959_v1 = vsel %vm790_vm5, %v8134_v34, %v6845_v56  ;;  %v6220_v56 = vld [vmem:[#allocation2] ss:$0 sm:$0xff] }
 0x627   :  { %v6849_v8 = vpop.permute.xlu1 %6848 }
 0x628   :  { %v6851_v15 = vunpack.i.h.bf16 %v6849_v8  ;;  %v6850_v22 = vunpack.i.l.bf16 %v6849_v8 }
 0x62a   :  { %v5962_v42 = vsel %vm790_vm5, %v8140_v54, %v6851_v15  ;;  %v5961_v48 = vsel %vm790_vm5, %v8136_v24, %v6850_v22 }
 0x62b   :  { %v6854_v20 = vpop.permute.xlu0 %6853 }
 0x62c   :  { %v6856_v40 = vunpack.i.h.bf16 %v6854_v20  ;;  %v6855_v7 = vunpack.i.l.bf16 %v6854_v20 }
 0x62e   :  { %v5964_v10 = vsel %vm346_vm2, %v5960_v41, %v6856_v40  ;;  %v5963_v26 = vsel %vm346_vm2, %v5959_v1, %v6855_v7  ;;  %v7064_v7 = vld [vmem:[%s8213_s0 + $0x10] sm:$0xff] }
 0x62f   :  { %v6859_v55 = vpop.permute.xlu1 %6858 }
 0x630   :  { %v6861_v61 = vunpack.i.h.bf16 %v6859_v55  ;;  %v6860_v50 = vunpack.i.l.bf16 %v6859_v55 }
 0x632   :  { %v5966_v51 = vsel %vm346_vm2, %v5962_v42, %v6861_v61  ;;  %v5965_v34 = vsel %vm346_vm2, %v5961_v48, %v6860_v50 }
 0x633   :  { %v6864_v62 = vpop.permute.xlu0 %6863 }
 0x634   :  { %v6866_v23 = vunpack.i.h.bf16 %v6864_v62  ;;  %v6865_v49 = vunpack.i.l.bf16 %v6864_v62 }
 0x636   :  { %v5969_v44 = vsel %vm5967_vm6, %v5964_v10, %v6866_v23  ;;  %v5968_v39 = vsel %vm5967_vm6, %v5963_v26, %v6865_v49  ;;  %v7065_v49 = vld [vmem:[%s8213_s0] sm:$0xff] }
 0x638   :  { %v6869_v36 = vpop.permute.xlu1 %6868 }
 0x639   :  { %v6871_v54 = vunpack.i.h.bf16 %v6869_v36  ;;  %v6870_v3 = vunpack.i.l.bf16 %v6869_v36 }
 0x63b   :  { %v5971_v43 = vsel %vm5967_vm6, %v5966_v51, %v6871_v54  ;;  %v5970_v60 = vsel %vm5967_vm6, %v5965_v34, %v6870_v3 }
 0x63c   :  { %v6874_v29 = vpop.permute.xlu0 %6873 }
 0x63d   :  { %v6876_v57 = vunpack.i.h.bf16 %v6874_v29  ;;  %v6875_v6 = vunpack.i.l.bf16 %v6874_v29 }
 0x63f   :  { %v5973_v24 = vsel %vm568_vm3, %v5969_v44, %v6876_v57  ;;  %v5972_v31 = vsel %vm568_vm3, %v5968_v39, %v6875_v6  ;;  %v7066_v57 = vld [vmem:[%s8213_s0 + $0x18] sm:$0xff] }
 0x641   :  { %v6879_v25 = vpop.permute.xlu1 %6878 }
 0x642   :  { %v6881_v11 = vunpack.i.h.bf16 %v6879_v25  ;;  %v6880_v58 = vunpack.i.l.bf16 %v6879_v25 }
 0x644   :  { %v5975_v37 = vsel %vm568_vm3, %v5971_v43, %v6881_v11  ;;  %v5974_v45 = vsel %vm568_vm3, %v5970_v60, %v6880_v58 }
 0x645   :  { %v6884_v32 = vpop.permute.xlu0 %6883 }
 0x646   :  { %v6886_v63 = vunpack.i.h.bf16 %v6884_v32  ;;  %v6885_v0 = vunpack.i.l.bf16 %v6884_v32 }
 0x648   :  { %v5978_v19 = vsel %vm5976_vm7, %v5973_v24, %v6886_v63  ;;  %v5977_v59 = vsel %vm5976_vm7, %v5972_v31, %v6885_v0 }
 0x649   :  { %v6889_v53 = vpop.permute.xlu1 %6888 }
 0x64a   :  { %v6891_v5 = vunpack.i.h.bf16 %v6889_v53  ;;  %v6890_v38 = vunpack.i.l.bf16 %v6889_v53  ;;  %v7067_v53 = vld [vmem:[%s8213_s0 + $0x8] sm:$0xff] }
 0x64c   :  { %v5980_v52 = vsel %vm5976_vm7, %v5975_v37, %v6891_v5  ;;  %v5979_v27 = vsel %vm5976_vm7, %v5974_v45, %v6890_v38 }
 0x64d   :  { %v6894_v33 = vpop.permute.xlu0 %6893 }
 0x64e   :  { %v6896_v28 = vunpack.i.h.bf16 %v6894_v33  ;;  %v6895_v35 = vunpack.i.l.bf16 %v6894_v33 }
 0x650   :  { %v5983_v4 = vsel %vm5981_vm8, %v5978_v19, %v6896_v28  ;;  %v5982_v14 = vsel %vm5981_vm8, %v5977_v59, %v6895_v35 }
 0x652   :  { %v6899_v2 = vpop.permute.xlu1 %6898 }
 0x653   :  { %v6901_v46 = vunpack.i.h.bf16 %v6899_v2  ;;  %v6900_v12 = vunpack.i.l.bf16 %v6899_v2 }
 0x655   :  { %v5985_v55 = vsel %vm5981_vm8, %v5980_v52, %v6901_v46  ;;  %v5984_v62 = vsel %vm5981_vm8, %v5979_v27, %v6900_v12 }
 0x658   :  { %v6904_v13 = vpop.permute.xlu0 %6903 }
 0x659   :  { %v6906_v16 = vunpack.i.h.bf16 %v6904_v13  ;;  %v6905_v9 = vunpack.i.l.bf16 %v6904_v13 }
 0x65b   :  { %v5988_v30 = vsel %vm5986_vm9, %v5983_v4, %v6906_v16  ;;  %v5987_v18 = vsel %vm5986_vm9, %v5982_v14, %v6905_v9 }
 0x65c   :  { %v5991_v17 = vpack.c.bf16 %v5988_v30, %v5987_v18  ;;  %v6909_v21 = vpop.permute.xlu1 %6908 }
 0x65d   :  { %v6911_v8 = vunpack.i.h.bf16 %v6909_v21  ;;  %v6910_v20 = vunpack.i.l.bf16 %v6909_v21 }
 0x65e   :  { %6790 = vmatprep.mubr.msk.bf16.mxu0 %vm84_vm0, %v5991_v17 }
 0x65f   :  { %v5990_v36 = vsel %vm5986_vm9, %v5985_v55, %v6911_v8  ;;  %v5989_v29 = vsel %vm5986_vm9, %v5984_v62, %v6910_v20 }
 0x660   :  { %v5992_v47 = vpack.c.bf16 %v5990_v36, %v5989_v29 }
 0x662   :  { %6791 = vmatmul.mubr.msk.bf16.vlgmr.msra.gmra.mrb[72].mxu0 %vm84_vm0, %v5992_v47 }
 0x735   :  { %v6792_v25 = vpop.f32.mrb[72].mxu0 }
 0x736   :  { %v6065_v32 = vadd.f32 %v6792_v25, %v6220_v56  ;;  %v6056_v15 = vpop.f32.mrb[73].mxu0 }
 0x737   :  { %v6057_v22 = vadd.f32 %v6220_v56, %v6056_v15  ;;  %v6793_v40 = vpop.f32.mrb[74].mxu0 }
 0x738   :  { %v6073_v61 = vadd.f32 %v7064_v7, %v6065_v32  ;;  %v6068_v50 = vadd.f32 %v6793_v40, %v6220_v56  ;;  %v6059_v23 = vpop.f32.mrb[75].mxu0 }
 0x739   :  { %v6071_v41 = vadd.f32 %v7065_v49, %v6057_v22  ;;  %v6060_v1 = vadd.f32 %v6220_v56, %v6059_v23 }
 0x73a   :  { %6077 = vst.msk [vmem:[#allocation5 + $0x10] sm:$0xff] %vm84_vm0, %v6073_v61  ;;  %v6074_v6 = vadd.f32 %v7066_v57, %v6068_v50 }
 0x73b   :  { %6075 = vst.msk [vmem:[#allocation5] sm:$0xff] %vm84_vm0, %v6071_v41  ;;  %v6072_v33 = vadd.f32 %v7067_v53, %v6060_v1 }
 0x73c   :  { %6078 = vst.msk [vmem:[#allocation5 + $0x18] sm:$0xff] %vm84_vm0, %v6074_v6 }
 0x73d   :  { %6076 = vst.msk [vmem:[#allocation5 + $0x8] sm:$0xff] %vm84_vm0, %v6072_v33 }
 0x73e   :  { %7101 = shalt.err (!%p7098_p12)
}
 0x73f   :  { %s7102_s7 = scalar_lea.hbm %s8225_s12, 512 }
 0x740   :  { %p7103_p13 = scmp.ne.s32.totalorder %s8225_s12, %s7102_s7  ;;  %p7106_p0 = scmp.lt.u32.totalorder %s7102_s7, %s8225_s12 }
 0x742   :  { %p7108_p1 = pnand %p7106_p0, %p7103_p13 }
 0x744   :  { %7111 = shalt.err (!%p7108_p1)
}
 0x745   :  { %s7135_s26 = smov 128  }
 0x746   :  { %6090 = dma.vmem_to_hbm [thread:$0]  %s6085_s4, 512, %s8225_s12, [#allocation4], %s7135_s26, %s7135_s26, %s7128_s2  }
 0x747   :  { %7114 = dma.done.wait [#allocation4], 512  }
 0x748   :  { %7115 = vsyncadd [#allocation4], 4294966784 }
 0x749   :  { %6094 = vsyncpa [#allocation3], 1 }
 0x74a   :  { %6095 = vsyncpa [#allocation4], 1 }

</bundles_post_ra>
